<compile_context>
chip_gen: v7x
topology: tpu7x:2x2x1
jax: 0.10.0
libtpu: 0.0.40
codegen_flags: <defaults>
</compile_context>

<pallas_src>
import math

import jax
import jax.numpy as jnp
from jax import lax
from jax.experimental import pallas as pl
from jax.experimental.pallas import tpu as pltpu


# --------------------------------------------------------------------------- #
# Tiling / VMEM budgeting
# --------------------------------------------------------------------------- #
_TILE_BUDGET_BYTES = 24 << 20      # double-buffered blocks + accumulator
_VMEM_LIMIT_BYTES = 48 << 20       # scoped VMEM cap (fits v5e/v6e 128 MiB, v7x 64 MiB)
_MAX_TILE_LANES = 131072           # reg kernel upper clamp (feedback: 64K-128K)
_PALLAS_MIN_HW = 1024              # below this a kernel launch is pure overhead
                                   # (production could raise this to ~8K)


def _round_up(x: int, m: int) -> int:
    return ((x + m - 1) // m) * m


def _pick_tile(hw: int, in_bytes_per_lane: int) -> int:
    """Pixels per grid step (lane axis).

    Budgeted in actual bytes: double-buffered input blocks + double-buffered
    (8, T) f32 accumulator.  Always a multiple of 128 lanes so input/output
    blocks stay lane-dense (unmasked vst)."""
    per_lane = 2 * in_bytes_per_lane + 2 * 8 * 4
    t = (_TILE_BUDGET_BYTES // per_lane) // 128 * 128
    t = max(128, min(t, _MAX_TILE_LANES))
    if hw <= t:
        return max(128, _round_up(hw, 128))
    return t


_COMPILER_PARAMS = pltpu.CompilerParams(
    dimension_semantics=("parallel", "arbitrary"),
    vmem_limit_bytes=_VMEM_LIMIT_BYTES,
)


# --------------------------------------------------------------------------- #
# Pallas kernels
# --------------------------------------------------------------------------- #
def _make_cls_kernel(hw: int, t: int, tail: bool):
    """Fused GT-argmin + cross-entropy + masked reduction + BCE-with-logits.

    Blocks: logits (1,C,T), target (1,2,T), prob (1,1,T), cert (1,1,T),
    grid (C,2).  Accumulator block (1,8,T): rows 0..3 = ce_sum, cnt, nz, bce."""

    def kernel(logits_ref, target_ref, prob_ref, cert_ref, g_ref, acc_ref):
        p = pl.program_id(1)

        @pl.when(p == 0)
        def _init():
            acc_ref[...] = jnp.zeros_like(acc_ref)

        logits = logits_ref[0].astype(jnp.float32)            # (C, T)
        txy = target_ref[0].astype(jnp.float32)                # (2, T)
        prob = prob_ref[0].astype(jnp.float32)                  # (1, T)
        cert = cert_ref[0].astype(jnp.float32)                  # (1, T)
        C = logits.shape[0]

        g = g_ref[...].astype(jnp.float32)                      # (C, 2)
        gsq = jnp.sum(g * g, axis=1, keepdims=True)             # (C, 1)

        # ||G_c - t||^2 = |G_c|^2 - 2 G_c.t + |t|^2 ; |t|^2 is constant per
        # pixel so the argmin is unchanged.  Cross term on the idle MXU.
        cross = jnp.dot(g, txy, preferred_element_type=jnp.float32)   # (C, T)
        dist_key = gsq - 2.0 * cross                             # (C, T)

        # first-min-index semantics (matches torch .min(dim).indices)
        min_d = jnp.min(dist_key, axis=0, keepdims=True)         # (1, T)
        cidx = lax.broadcasted_iota(jnp.int32, dist_key.shape, 0)
        gt = jnp.min(jnp.where(dist_key <= min_d, cidx, C), axis=0, keepdims=True)
        onehot = cidx == gt                                      # (C, T)

        # cross entropy = logsumexp(logits) - logits[GT]
        tgt_logit = jnp.sum(jnp.where(onehot, logits, 0.0), axis=0, keepdims=True)
        mx = jnp.max(logits, axis=0, keepdims=True)
        lse = mx + jnp.log(jnp.sum(jnp.exp(logits - mx), axis=0, keepdims=True))
        ce = lse - tgt_logit                                     # (1, T)

        m = (prob > 0.99).astype(jnp.float32)

        # BCE with logits (mean over all real pixels taken host-side as sum / N)
        bce = (jnp.maximum(cert, 0.0) - cert * prob
               + jnp.log1p(jnp.exp(-jnp.abs(cert))))             # (1, T)

        ce_m = ce * m
        nz_v = m * jnp.where(ce != 0.0, 1.0, 0.0)

        if tail:
            # Mask only the four (1,T) result rows.  Select (NOT multiply):
            # OOB block padding may hold NaN/Inf and NaN*0 would poison acc.
            pix = p * t + lax.broadcasted_iota(jnp.int32, (1, t), 1)
            inb = pix < hw
            ce_m = jnp.where(inb, ce_m, 0.0)
            m = jnp.where(inb, m, 0.0)
            nz_v = jnp.where(inb, nz_v, 0.0)
            bce = jnp.where(inb, bce, 0.0)

        row = lax.broadcasted_iota(jnp.int32, (8, t), 0)
        upd = jnp.where(row == 0, ce_m,
              jnp.where(row == 1, m,
              jnp.where(row == 2, nz_v,
              jnp.where(row == 3, bce, 0.0))))                   # (8, T)
        acc_ref[0] += upd

    return kernel


def _make_reg_kernel(hw: int, t: int, tail: bool, cs: float, a: float):
    """Fused EPE + robust regression loss + masked reduction + BCE-with-logits.

    Blocks: flow (1,2,T), target (1,2,T), prob (1,1,T), cert (1,1,T).
    Accumulator block (1,8,T): rows 0..3 = reg_sum, cnt, nz, bce partials."""
    inv_cs2 = 1.0 / (cs * cs)
    cs_a = cs ** a
    half_a = a / 2.0

    def kernel(flow_ref, target_ref, prob_ref, cert_ref, acc_ref):
        p = pl.program_id(1)

        @pl.when(p == 0)
        def _init():
            acc_ref[...] = jnp.zeros_like(acc_ref)

        flow = flow_ref[0].astype(jnp.float32)                   # (2, T)
        txy = target_ref[0].astype(jnp.float32)                  # (2, T)
        prob = prob_ref[0].astype(jnp.float32)                   # (1, T)
        cert = cert_ref[0].astype(jnp.float32)                   # (1, T)

        dx = flow[0:1, :] - txy[0:1, :]
        dy = flow[1:2, :] - txy[1:2, :]
        # cs**a * ((epe/cs)**2 + 1)**(a/2) with the sqrt folded away
        base = (dx * dx + dy * dy) * inv_cs2 + 1.0               # >= 1, safe log
        if half_a == 0.5:
            pw = jnp.sqrt(base)
        else:
            pw = jnp.exp(half_a * jnp.log(base))
        reg = cs_a * pw                                          # (1, T)

        m = (prob > 0.99).astype(jnp.float32)
        bce = (jnp.maximum(cert, 0.0) - cert * prob
               + jnp.log1p(jnp.exp(-jnp.abs(cert))))

        reg_m = reg * m
        # reg > 0 always, so nz == cnt on masked pixels; kept explicit so the
        # torch.any(reg_loss) semantics survive future refactors.
        nz_v = m * jnp.where(reg != 0.0, 1.0, 0.0)

        if tail:
            pix = p * t + lax.broadcasted_iota(jnp.int32, (1, t), 1)
            inb = pix < hw
            reg_m = jnp.where(inb, reg_m, 0.0)
            m = jnp.where(inb, m, 0.0)
            nz_v = jnp.where(inb, nz_v, 0.0)
            bce = jnp.where(inb, bce, 0.0)

        row = lax.broadcasted_iota(jnp.int32, (8, t), 0)
        upd = jnp.where(row == 0, reg_m,
              jnp.where(row == 1, m,
              jnp.where(row == 2, nz_v,
              jnp.where(row == 3, bce, 0.0))))
        acc_ref[0] += upd

    return kernel


# --------------------------------------------------------------------------- #
# Shared finalization and small-scale (pure-jnp) fallbacks
# --------------------------------------------------------------------------- #
def _finalize(acc, n_total):
    """acc: (B, 8, T) lane partials -> (cert_mean, masked_mean)."""
    s_sum = jnp.sum(acc[:, 0, :])
    cnt = jnp.sum(acc[:, 1, :])
    nz = jnp.sum(acc[:, 2, :])
    bce_sum = jnp.sum(acc[:, 3, :])
    masked_mean = jnp.where(nz > 0, s_sum / jnp.maximum(cnt, 1.0), 0.0)
    cert_mean = bce_sum / n_total
    return cert_mean, masked_mean


def _bce_with_logits_mean(cert, prob):
    cert = cert.astype(jnp.float32)
    prob = prob.astype(jnp.float32)
    bce = jnp.maximum(cert, 0.0) - cert * prob + jnp.log1p(jnp.exp(-jnp.abs(cert)))
    return jnp.mean(bce)


def _cls_loss_jnp(logits, target, prob, cert, grid_xy):
    # logits (B,C,HW), target (B,2,HW), prob/cert (B,HW), grid_xy (C,2)
    logits = logits.astype(jnp.float32)
    prob = prob.astype(jnp.float32)
    tx = target[:, 0].astype(jnp.float32)[:, None, :]
    ty = target[:, 1].astype(jnp.float32)[:, None, :]
    gx = grid_xy[:, 0][None, :, None]
    gy = grid_xy[:, 1][None, :, None]
    dist2 = (gx - tx) ** 2 + (gy - ty) ** 2                      # (B,C,HW)
    gt = jnp.argmin(dist2, axis=1)                               # first-min index
    lse = jax.nn.logsumexp(logits, axis=1)                       # (B,HW)
    tgt = jnp.take_along_axis(logits, gt[:, None, :], axis=1)[:, 0]
    ce = lse - tgt
    m = (prob > 0.99).astype(jnp.float32)
    cnt = jnp.sum(m)
    nz = jnp.sum(m * (ce != 0.0))
    masked_mean = jnp.where(nz > 0, jnp.sum(ce * m) / jnp.maximum(cnt, 1.0), 0.0)
    return _bce_with_logits_mean(cert, prob), masked_mean


def _reg_loss_jnp(flow, target, prob, cert, cs, a):
    # flow/target (B,2,HW), prob/cert (B,HW)
    dx = flow[:, 0].astype(jnp.float32) - target[:, 0].astype(jnp.float32)
    dy = flow[:, 1].astype(jnp.float32) - target[:, 1].astype(jnp.float32)
    base = (dx * dx + dy * dy) / (cs * cs) + 1.0
    reg = (cs ** a) * base ** (a / 2.0)
    prob = prob.astype(jnp.float32)
    m = (prob > 0.99).astype(jnp.float32)
    cnt = jnp.sum(m)
    nz = jnp.sum(m * (reg != 0.0))
    masked_mean = jnp.where(nz > 0, jnp.sum(reg * m) / jnp.maximum(cnt, 1.0), 0.0)
    return _bce_with_logits_mean(cert, prob), masked_mean


# --------------------------------------------------------------------------- #
# JAX wrappers around the kernels
# --------------------------------------------------------------------------- #
def cls_loss_pallas(logits_nchw, target_xy, prob, cert_logit, grid_xy):
    """Mirrors gm_cls_loss / delta_cls_loss semantics (incl. empty/all-zero case).

    logits_nchw: (B, C, H, W)   target_xy: (B, H, W, 2)
    prob, cert_logit: (B, H, W) grid_xy: (C, 2)
    """
    B, C, H, W = logits_nchw.shape
    HW = H * W
    N = B * HW

    logits = logits_nchw.reshape(B, C, HW)                 # free reshape, native dtype
    target = jnp.moveaxis(target_xy.reshape(B, HW, 2), -1, 1)   # (B, 2, HW) tiny copy
    prob2 = prob.reshape(B, 1, HW)                         # free reshape, native dtype
    cert2 = cert_logit.reshape(B, 1, HW)                   # free reshape, native dtype
    g = grid_xy.astype(jnp.float32)                        # (C, 2)

    if HW < _PALLAS_MIN_HW:
        return _cls_loss_jnp(logits, target, prob2[:, 0], cert2[:, 0], g)

    itm = lambda x: jnp.dtype(x.dtype).itemsize
    in_bpl = C * itm(logits) + 2 * itm(target) + itm(prob2) + itm(cert2)
    T = _pick_tile(HW, in_bpl)
    P = pl.cdiv(HW, T)
    tail = (HW % T) != 0

    acc = pl.pallas_call(
        _make_cls_kernel(HW, T, tail),
        out_shape=jax.ShapeDtypeStruct((B, 8, T), jnp.float32),
        grid=(B, P),
        in_specs=[
            pl.BlockSpec((1, C, T), lambda b, p: (b, 0, p)),
            pl.BlockSpec((1, 2, T), lambda b, p: (b, 0, p)),
            pl.BlockSpec((1, 1, T), lambda b, p: (b, 0, p)),
            pl.BlockSpec((1, 1, T), lambda b, p: (b, 0, p)),
            pl.BlockSpec((C, 2), lambda b, p: (0, 0)),
        ],
        out_specs=pl.BlockSpec((1, 8, T), lambda b, p: (b, 0, 0)),
        compiler_params=_COMPILER_PARAMS,
    )(logits, target, prob2, cert2, g)

    return _finalize(acc, N)


def regression_loss_pallas(flow_nchw, x2, prob, cert_logit, cs, a):
    """Returns (certainty_loss_mean, regression_loss_mean).

    flow_nchw: (B, 2, H, W)  x2: (B, H, W, 2)  prob, cert_logit: (B, H, W)
    """
    B, _, H, W = flow_nchw.shape
    HW = H * W
    N = B * HW

    flow = flow_nchw.reshape(B, 2, HW)                     # free reshape, native dtype
    target = jnp.moveaxis(x2.reshape(B, HW, 2), -1, 1)     # (B, 2, HW) tiny copy
    prob2 = prob.reshape(B, 1, HW)
    cert2 = cert_logit.reshape(B, 1, HW)

    if HW < _PALLAS_MIN_HW:
        return _reg_loss_jnp(flow, target, prob2[:, 0], cert2[:, 0], float(cs), float(a))

    itm = lambda x: jnp.dtype(x.dtype).itemsize
    in_bpl = 2 * itm(flow) + 2 * itm(target) + itm(prob2) + itm(cert2)
    T = _pick_tile(HW, in_bpl)
    P = pl.cdiv(HW, T)
    tail = (HW % T) != 0

    acc = pl.pallas_call(
        _make_reg_kernel(HW, T, tail, float(cs), float(a)),
        out_shape=jax.ShapeDtypeStruct((B, 8, T), jnp.float32),
        grid=(B, P),
        in_specs=[
            pl.BlockSpec((1, 2, T), lambda b, p: (b, 0, p)),
            pl.BlockSpec((1, 2, T), lambda b, p: (b, 0, p)),
            pl.BlockSpec((1, 1, T), lambda b, p: (b, 0, p)),
            pl.BlockSpec((1, 1, T), lambda b, p: (b, 0, p)),
        ],
        out_specs=pl.BlockSpec((1, 8, T), lambda b, p: (b, 0, 0)),
        compiler_params=_COMPILER_PARAMS,
    )(flow, target, prob2, cert2)

    return _finalize(acc, N)


# --------------------------------------------------------------------------- #
# Plain-JAX glue
# --------------------------------------------------------------------------- #
def nearest_exact_resize(x, H, W):
    """F.interpolate(..., mode='nearest-exact') for (B, Hs, Ws) inputs."""
    _, Hs, Ws = x.shape
    ri = jnp.clip(jnp.floor((jnp.arange(H) + 0.5) * Hs / H).astype(jnp.int32), 0, Hs - 1)
    ci = jnp.clip(jnp.floor((jnp.arange(W) + 0.5) * Ws / W).astype(jnp.int32), 0, Ws - 1)
    return x[:, ri][:, :, ci]


def get_gt_warp(depthA, depthB, T_1to2, K1, K2, H, W):
    # TODO(synk): real get_gt_warp does geometric unproject/transform/project +
    # depth-consistency grid_sample; that dataset-side glue is replaced here by a
    # deterministic identity warp + depth-validity probability.
    B = depthA.shape[0]
    dA = nearest_exact_resize(depthA, H, W)
    dB = nearest_exact_resize(depthB, H, W)
    ys = (jnp.arange(H) + 0.5) / H * 2.0 - 1.0
    xs = (jnp.arange(W) + 0.5) / W * 2.0 - 1.0
    gy, gx = jnp.meshgrid(ys, xs, indexing="ij")
    warp = jnp.broadcast_to(jnp.stack([gx, gy], axis=-1)[None], (B, H, W, 2))
    prob = ((dA > 0) & (dB > 0)).astype(jnp.float32)
    return warp.astype(jnp.float32), prob


def _cls_grid(C):
    res = int(round(math.sqrt(C)))
    lin = jnp.linspace(-1.0 + 1.0 / res, 1.0 - 1.0 / res, res)
    gy, gx = jnp.meshgrid(lin, lin, indexing="ij")          # gy=G[0] (rows), gx=G[1] (cols)
    return jnp.stack([gx.reshape(-1), gy.reshape(-1)], axis=-1)  # (C, 2) as (x, y)


class RobustLossesPallas:
    def __init__(self, ce_weight=0.01, local_loss=True, local_dist=None,
                 local_largest_scale=8, alpha=1.0, c=0.001):
        self.ce_weight = ce_weight
        self.local_loss = local_loss
        # original code indexes local_dist[scale]; RoMa passes it as a dict.
        self.local_dist = local_dist if local_dist is not None else {
            1: 4.0, 2: 4.0, 4: 4.0, 8: 4.0, 16: 4.0}
        self.local_largest_scale = local_largest_scale
        self.alpha = alpha
        self.c = c

    # ----- per-scale losses ----- #
    def gm_cls_loss(self, x2, prob, scale_gm_cls, gm_certainty, scale):
        C = scale_gm_cls.shape[1]
        grid_xy = _cls_grid(C)
        cert_mean, cls_mean = cls_loss_pallas(
            scale_gm_cls, x2, prob, gm_certainty[:, 0], grid_xy)
        # TODO(synk): wandb.log skipped (no logging backend in-kernel).
        return {f"gm_certainty_loss_{scale}": cert_mean,
                f"gm_cls_loss_{scale}": cls_mean}

    def delta_cls_loss(self, x2, prob, flow_pre_delta, delta_cls, certainty,
                       scale, offset_scale):
        C = delta_cls.shape[1]
        grid_xy = _cls_grid(C) * offset_scale
        # argmin_c ||G*os + fpd - x2||  ==  argmin_c ||G*os - (x2 - fpd)||
        target = x2 - flow_pre_delta
        cert_mean, cls_mean = cls_loss_pallas(
            delta_cls, target, prob, certainty[:, 0], grid_xy)
        return {f"delta_certainty_loss_{scale}": cert_mean,
                f"delta_cls_loss_{scale}": cls_mean}

    def regression_loss(self, x2, prob, flow, certainty, scale, mode="delta"):
        a = self.alpha[scale] if isinstance(self.alpha, dict) else self.alpha
        cs = self.c * scale
        # TODO(synk): train_pck_05 wandb logging at scale==1 skipped.
        cert_mean, reg_mean = regression_loss_pallas(
            flow, x2, prob, certainty[:, 0], cs, a)
        return {f"{mode}_certainty_loss_{scale}": cert_mean,
                f"{mode}_regression_loss_{scale}": reg_mean}

    # ----- forward ----- #
    def forward(self, corresps, batch):
        scales = list(corresps.keys())
        tot_loss = jnp.float32(0.0)
        scale_weights = {1: 1, 2: 1, 4: 1, 8: 1, 16: 1}
        prev_epe = None

        for scale in scales:
            sc = corresps[scale]
            scale_certainty = sc["certainty"]
            flow_pre_delta = sc.get("flow_pre_delta")
            delta_cls = sc.get("delta_cls")
            offset_scale = sc.get("offset_scale")
            scale_gm_cls = sc.get("gm_cls")
            scale_gm_certainty = sc.get("gm_certainty")
            flow = sc["flow"]
            scale_gm_flow = sc.get("gm_flow")

            if flow_pre_delta is not None:
                flow_pre_delta = jnp.transpose(flow_pre_delta, (0, 2, 3, 1))
                b, h, w, d = flow_pre_delta.shape
            else:
                b, _, h, w = scale_certainty.shape

            gt_warp, gt_prob = get_gt_warp(
                batch["im_A_depth"], batch["im_B_depth"],
                batch["T_1to2"], batch["K1"], batch["K2"], H=h, W=w)
            x2 = gt_warp.astype(jnp.float32)
            prob = gt_prob

            if self.local_largest_scale >= scale and prev_epe is not None:
                thresh = 2.0 / 512.0 * (self.local_dist[scale] * scale)
                prob = prob * (nearest_exact_resize(prev_epe, h, w) < thresh
                               ).astype(prob.dtype)

            if scale_gm_cls is not None:
                gm_cls_losses = self.gm_cls_loss(
                    x2, prob, scale_gm_cls, scale_gm_certainty, scale)
                gm_loss = (self.ce_weight * gm_cls_losses[f"gm_certainty_loss_{scale}"]
                           + gm_cls_losses[f"gm_cls_loss_{scale}"])
                tot_loss = tot_loss + scale_weights[scale] * gm_loss
            elif scale_gm_flow is not None:
                gm_flow_losses = self.regression_loss(
                    x2, prob, scale_gm_flow, scale_gm_certainty, scale, mode="gm")
                gm_loss = (self.ce_weight * gm_flow_losses[f"gm_certainty_loss_{scale}"]
                           + gm_flow_losses[f"gm_regression_loss_{scale}"])
                tot_loss = tot_loss + scale_weights[scale] * gm_loss

            if delta_cls is not None:
                delta_cls_losses = self.delta_cls_loss(
                    x2, prob, flow_pre_delta, delta_cls, scale_certainty,
                    scale, offset_scale)
                dloss = (self.ce_weight * delta_cls_losses[f"delta_certainty_loss_{scale}"]
                         + delta_cls_losses[f"delta_cls_loss_{scale}"])
                tot_loss = tot_loss + scale_weights[scale] * dloss
            else:
                delta_reg_losses = self.regression_loss(
                    x2, prob, flow, scale_certainty, scale)
                rloss = (self.ce_weight * delta_reg_losses[f"delta_certainty_loss_{scale}"]
                         + delta_reg_losses[f"delta_regression_loss_{scale}"])
                tot_loss = tot_loss + scale_weights[scale] * rloss

            # prev_epe (detached in torch; no grads here anyway).
            # Computed channel-first to avoid transposing the model output.
            warp_cf = jnp.moveaxis(x2, -1, 1)                      # (B, 2, H, W)
            prev_epe = jnp.sqrt(jnp.sum((flow - warp_cf) ** 2, axis=1))

        return tot_loss


# --------------------------------------------------------------------------- #
# Demo
# --------------------------------------------------------------------------- #
if __name__ == "__main__":
    key = jax.random.PRNGKey(0)
    ks = jax.random.split(key, 16)
    B = 2

    # batch (depths positive everywhere so gt_prob is mostly 1)
    depthA = jax.random.uniform(ks[0], (B, 64, 64), jnp.float32, 0.5, 2.0)
    depthB = jax.random.uniform(ks[1], (B, 64, 64), jnp.float32, 0.5, 2.0)
    batch = {
        "im_A_depth": depthA,
        "im_B_depth": depthB,
        "T_1to2": jnp.broadcast_to(jnp.eye(4, dtype=jnp.float32)[None], (B, 4, 4)),
        "K1": jnp.broadcast_to(jnp.eye(3, dtype=jnp.float32)[None], (B, 3, 3)),
        "K2": jnp.broadcast_to(jnp.eye(3, dtype=jnp.float32)[None], (B, 3, 3)),
    }

    def rnd(k, shape, scale=1.0):
        return scale * jax.random.normal(k, shape, jnp.float32)

    corresps = {
        16: {  # coarse scale (16x16): global-matching cls + flow (tiny -> jnp path)
            "certainty": rnd(ks[2], (B, 1, 16, 16)),
            "gm_certainty": rnd(ks[3], (B, 1, 16, 16)),
            "gm_cls": rnd(ks[4], (B, 64, 16, 16)),
            "flow": rnd(ks[5], (B, 2, 16, 16), 0.3),
        },
        8: {   # delta-classification scale (32x32) -> Pallas cls kernel
            "certainty": rnd(ks[6], (B, 1, 32, 32)),
            "flow_pre_delta": rnd(ks[7], (B, 2, 32, 32), 0.3),
            "delta_cls": rnd(ks[8], (B, 25, 32, 32)),
            "offset_scale": 0.1,
            "flow": rnd(ks[9], (B, 2, 32, 32), 0.3),
        },
        1: {   # fine scale (64x64): flow regression -> Pallas reg kernel
            "certainty": rnd(ks[10], (B, 1, 64, 64)),
            "flow": rnd(ks[11], (B, 2, 64, 64), 0.3),
        },
    }

    loss_mod = RobustLossesPallas()
    tot = loss_mod.forward(corresps, batch)
    tot = jax.block_until_ready(tot)
    assert jnp.isfinite(tot)
    print("KERNEL_OK")
</pallas_src>

<mosaic_0001>
module attributes {stable_mosaic.version = 11 : i64} {
  func.func @kernel(%arg0: i32, %arg1: i32, %arg2: memref<1x25x1024xf32, #tpu.memory_space<vmem>>, %arg3: memref<1x2x1024xf32, #tpu.memory_space<vmem>>, %arg4: memref<1x1x1024xf32, #tpu.memory_space<vmem>>, %arg5: memref<1x1x1024xf32, #tpu.memory_space<vmem>>, %arg6: memref<25x2xf32, #tpu.memory_space<vmem>>, %arg7: memref<1x8x1024xf32, #tpu.memory_space<vmem>>) attributes {dimension_semantics = [#tpu.dimension_semantics<parallel>, #tpu.dimension_semantics<arbitrary>], iteration_bounds = array<i64: 2, 1>, scalar_prefetch = 0 : i64, scratch_operands = 0 : i64, tpu.core_type = #tpu.core_type<tc>, window_params = [{transform_indices = @transform_0, window_bounds = array<i64: 1, 25, 1024>}, {transform_indices = @transform_1, window_bounds = array<i64: 1, 2, 1024>}, {transform_indices = @transform_2, window_bounds = array<i64: 1, 1, 1024>}, {transform_indices = @transform_3, window_bounds = array<i64: 1, 1, 1024>}, {pipeline_mode = #tpu.pipeline_mode<synchronous>, transform_indices = @transform_4, window_bounds = array<i64: 25, 2>}, {transform_indices = @transform_5, window_bounds = array<i64: 1, 8, 1024>}]} {
    %c0_i32 = arith.constant 0 : i32
    %0 = arith.cmpi eq, %arg1, %c0_i32 : i32
    %1 = arith.extui %0 : i1 to i32
    %c0_i32_0 = arith.constant 0 : i32
    %2 = arith.cmpi ne, %1, %c0_i32_0 : i32
    scf.if %2 {
      %cst_36 = arith.constant 0.000000e+00 : f32
      %94 = vector.broadcast %cst_36 : f32 to vector<1x8x1024xf32>
      %c0_37 = arith.constant 0 : index
      %c0_38 = arith.constant 0 : index
      %c0_39 = arith.constant 0 : index
      %95 = vector.load %arg7[%c0_37, %c0_38, %c0_39] : memref<1x8x1024xf32, #tpu.memory_space<vmem>>, vector<1x8x1024xf32>
      tpu.vector_store %arg7[%c0_37, %c0_38, %c0_39], %94 {strides = array<i32>} : memref<1x8x1024xf32, #tpu.memory_space<vmem>>, vector<1x8x1024xf32>,
    } else {
    }
    %c0 = arith.constant 0 : index
    %c0_1 = arith.constant 0 : index
    %c0_2 = arith.constant 0 : index
    %3 = vector.load %arg2[%c0, %c0_1, %c0_2] : memref<1x25x1024xf32, #tpu.memory_space<vmem>>, vector<1x25x1024xf32>
    %4 = vector.shape_cast %3 : vector<1x25x1024xf32> to vector<25x1024xf32>
    %c0_3 = arith.constant 0 : index
    %c0_4 = arith.constant 0 : index
    %c0_5 = arith.constant 0 : index
    %5 = vector.load %arg3[%c0_3, %c0_4, %c0_5] : memref<1x2x1024xf32, #tpu.memory_space<vmem>>, vector<1x2x1024xf32>
    %6 = vector.shape_cast %5 : vector<1x2x1024xf32> to vector<2x1024xf32>
    %c0_6 = arith.constant 0 : index
    %c0_7 = arith.constant 0 : index
    %c0_8 = arith.constant 0 : index
    %7 = vector.load %arg4[%c0_6, %c0_7, %c0_8] : memref<1x1x1024xf32, #tpu.memory_space<vmem>>, vector<1x1x1024xf32>
    %8 = vector.shape_cast %7 : vector<1x1x1024xf32> to vector<1x1024xf32>
    %c0_9 = arith.constant 0 : index
    %c0_10 = arith.constant 0 : index
    %c0_11 = arith.constant 0 : index
    %9 = vector.load %arg5[%c0_9, %c0_10, %c0_11] : memref<1x1x1024xf32, #tpu.memory_space<vmem>>, vector<1x1x1024xf32>
    %10 = vector.shape_cast %9 : vector<1x1x1024xf32> to vector<1x1024xf32>
    %c0_12 = arith.constant 0 : index
    %c0_13 = arith.constant 0 : index
    %11 = vector.load %arg6[%c0_12, %c0_13] : memref<25x2xf32, #tpu.memory_space<vmem>>, vector<25x2xf32>
    %12 = arith.mulf %11, %11 : vector<25x2xf32>
    %cst = arith.constant dense<0.000000e+00> : vector<25xf32>
    %13 = vector.multi_reduction <add>, %12, %cst [1] : vector<25x2xf32> to vector<25xf32>
    %14 = vector.shape_cast %13 : vector<25xf32> to vector<25x1xf32>
    %cst_14 = arith.constant dense<0.000000e+00> : vector<25x1024xf32>
    %15 = tpu.matmul %11, %6, %cst_14 {dimension_numbers = #tpu.dot_dimension_numbers<[1], [0], [0], [1], [0, 0, 1, 1], [], []>} : vector<25x2xf32>, vector<2x1024xf32>, vector<25x1024xf32> -> vector<25x1024xf32>
    %cst_15 = arith.constant 2.000000e+00 : f32
    %16 = vector.broadcast %cst_15 : f32 to vector<25x1024xf32>
    %17 = arith.mulf %16, %15 : vector<25x1024xf32>
    %18 = vector.broadcast %14 : vector<25x1xf32> to vector<25x1024xf32>
    %19 = arith.subf %18, %17 : vector<25x1024xf32>
    %cst_16 = arith.constant dense<0x7F800000> : vector<1024xf32>
    %20 = vector.multi_reduction <minimumf>, %19, %cst_16 [0] : vector<25x1024xf32> to vector<1024xf32>
    %21 = vector.shape_cast %20 : vector<1024xf32> to vector<1x1024xf32>
    %22 = tpu.iota {dimensions = array<i32: 0>} : vector<25x1024xi32>
    %23 = vector.broadcast %21 : vector<1x1024xf32> to vector<25x1024xf32>
    %24 = arith.cmpf ole, %19, %23 : vector<25x1024xf32>
    %c25_i32 = arith.constant 25 : i32
    %25 = vector.broadcast %c25_i32 : i32 to vector<25x1024xi32>
    %26 = arith.select %24, %22, %25 : vector<25x1024xi1>, vector<25x1024xi32>
    %cst_17 = arith.constant dense<2147483647> : vector<1024xi32>
    %27 = vector.multi_reduction <minsi>, %26, %cst_17 [0] : vector<25x1024xi32> to vector<1024xi32>
    %28 = vector.shape_cast %27 : vector<1024xi32> to vector<1x1024xi32>
    %29 = vector.broadcast %28 : vector<1x1024xi32> to vector<25x1024xi32>
    %30 = arith.cmpi eq, %22, %29 : vector<25x1024xi32>
    %cst_18 = arith.constant 0.000000e+00 : f32
    %31 = vector.broadcast %cst_18 : f32 to vector<25x1024xf32>
    %32 = arith.select %30, %4, %31 : vector<25x1024xi1>, vector<25x1024xf32>
    %cst_19 = arith.constant dense<0.000000e+00> : vector<1024xf32>
    %33 = vector.multi_reduction <add>, %32, %cst_19 [0] : vector<25x1024xf32> to vector<1024xf32>
    %34 = vector.shape_cast %33 : vector<1024xf32> to vector<1x1024xf32>
    %cst_20 = arith.constant dense<0xFF800000> : vector<1024xf32>
    %35 = vector.multi_reduction <maximumf>, %4, %cst_20 [0] : vector<25x1024xf32> to vector<1024xf32>
    %36 = vector.shape_cast %35 : vector<1024xf32> to vector<1x1024xf32>
    %37 = vector.broadcast %36 : vector<1x1024xf32> to vector<25x1024xf32>
    %38 = arith.subf %4, %37 : vector<25x1024xf32>
    %39 = math.exp %38 : vector<25x1024xf32>
    %cst_21 = arith.constant dense<0.000000e+00> : vector<1024xf32>
    %40 = vector.multi_reduction <add>, %39, %cst_21 [0] : vector<25x1024xf32> to vector<1024xf32>
    %41 = vector.shape_cast %40 : vector<1024xf32> to vector<1x1024xf32>
    %42 = math.log %41 : vector<1x1024xf32>
    %43 = arith.addf %36, %42 : vector<1x1024xf32>
    %44 = arith.subf %43, %34 : vector<1x1024xf32>
    %cst_22 = arith.constant 9.900000e-01 : f32
    %45 = vector.broadcast %cst_22 : f32 to vector<1x1024xf32>
    %46 = arith.cmpf ogt, %8, %45 : vector<1x1024xf32>
    %47 = arith.extui %46 : vector<1x1024xi1> to vector<1x1024xi32>
    %48 = arith.sitofp %47 : vector<1x1024xi32> to vector<1x1024xf32>
    %cst_23 = arith.constant 0.000000e+00 : f32
    %49 = vector.broadcast %cst_23 : f32 to vector<1x1024xf32>
    %50 = arith.maximumf %10, %49 : vector<1x1024xf32>
    %51 = arith.mulf %10, %8 : vector<1x1024xf32>
    %52 = arith.subf %50, %51 : vector<1x1024xf32>
    %53 = math.absf %10 : vector<1x1024xf32>
    %cst_24 = arith.constant 0.000000e+00 : f32
    %54 = vector.broadcast %cst_24 : f32 to vector<1x1024xf32>
    %55 = arith.subf %54, %53 : vector<1x1024xf32>
    %56 = math.exp %55 : vector<1x1024xf32>
    %57 = math.log1p %56 : vector<1x1024xf32>
    %58 = arith.addf %52, %57 : vector<1x1024xf32>
    %59 = arith.mulf %44, %48 : vector<1x1024xf32>
    %cst_25 = arith.constant 0.000000e+00 : f32
    %60 = vector.broadcast %cst_25 : f32 to vector<1x1024xf32>
    %61 = arith.cmpf one, %44, %60 : vector<1x1024xf32>
    %cst_26 = arith.constant 1.000000e+00 : f32
    %cst_27 = arith.constant 0.000000e+00 : f32
    %62 = vector.broadcast %cst_26 : f32 to vector<1x1024xf32>
    %63 = vector.broadcast %cst_27 : f32 to vector<1x1024xf32>
    %64 = arith.select %61, %62, %63 : vector<1x1024xi1>, vector<1x1024xf32>
    %65 = arith.mulf %48, %64 : vector<1x1024xf32>
    %66 = tpu.iota {dimensions = array<i32: 0>} : vector<8x1024xi32>
    %c0_i32_28 = arith.constant 0 : i32
    %67 = vector.broadcast %c0_i32_28 : i32 to vector<8x1024xi32>
    %68 = arith.cmpi eq, %66, %67 : vector<8x1024xi32>
    %c1_i32 = arith.constant 1 : i32
    %69 = vector.broadcast %c1_i32 : i32 to vector<8x1024xi32>
    %70 = arith.cmpi eq, %66, %69 : vector<8x1024xi32>
    %c2_i32 = arith.constant 2 : i32
    %71 = vector.broadcast %c2_i32 : i32 to vector<8x1024xi32>
    %72 = arith.cmpi eq, %66, %71 : vector<8x1024xi32>
    %c3_i32 = arith.constant 3 : i32
    %73 = vector.broadcast %c3_i32 : i32 to vector<8x1024xi32>
    %74 = arith.cmpi eq, %66, %73 : vector<8x1024xi32>
    %cst_29 = arith.constant 0.000000e+00 : f32
    %75 = vector.shape_cast %58 : vector<1x1024xf32> to vector<1x1024xf32>
    %76 = vector.broadcast %75 : vector<1x1024xf32> to vector<8x1024xf32>
    %77 = vector.broadcast %cst_29 : f32 to vector<8x1024xf32>
    %78 = arith.select %74, %76, %77 : vector<8x1024xi1>, vector<8x1024xf32>
    %79 = vector.shape_cast %65 : vector<1x1024xf32> to vector<1x1024xf32>
    %80 = vector.broadcast %79 : vector<1x1024xf32> to vector<8x1024xf32>
    %81 = arith.select %72, %80, %78 : vector<8x1024xi1>, vector<8x1024xf32>
    %82 = vector.shape_cast %48 : vector<1x1024xf32> to vector<1x1024xf32>
    %83 = vector.broadcast %82 : vector<1x1024xf32> to vector<8x1024xf32>
    %84 = arith.select %70, %83, %81 : vector<8x1024xi1>, vector<8x1024xf32>
    %85 = vector.shape_cast %59 : vector<1x1024xf32> to vector<1x1024xf32>
    %86 = vector.broadcast %85 : vector<1x1024xf32> to vector<8x1024xf32>
    %87 = arith.select %68, %86, %84 : vector<8x1024xi1>, vector<8x1024xf32>
    %c0_30 = arith.constant 0 : index
    %c0_31 = arith.constant 0 : index
    %c0_32 = arith.constant 0 : index
    %88 = vector.load %arg7[%c0_30, %c0_31, %c0_32] : memref<1x8x1024xf32, #tpu.memory_space<vmem>>, vector<1x8x1024xf32>
    %89 = vector.shape_cast %88 : vector<1x8x1024xf32> to vector<8x1024xf32>
    %90 = arith.addf %89, %87 : vector<8x1024xf32>
    %c0_33 = arith.constant 0 : index
    %c0_34 = arith.constant 0 : index
    %c0_35 = arith.constant 0 : index
    %91 = vector.load %arg7[%c0_33, %c0_34, %c0_35] : memref<1x8x1024xf32, #tpu.memory_space<vmem>>, vector<1x8x1024xf32>
    %92 = vector.shape_cast %91 : vector<1x8x1024xf32> to vector<8x1024xf32>
    %93 = vector.shape_cast %90 : vector<8x1024xf32> to vector<1x8x1024xf32>
    tpu.vector_store %arg7[%c0_33, %c0_34, %c0_35], %93 {strides = array<i32>} : memref<1x8x1024xf32, #tpu.memory_space<vmem>>, vector<1x8x1024xf32>,
    return
  }
  func.func @transform_0(%arg0: i32, %arg1: i32) -> (i32, i32, i32) {
    %c0_i32 = arith.constant 0 : i32
    %c0_i32_0 = arith.constant 0 : i32
    return %arg0, %c0_i32, %arg1 : i32, i32, i32
  }
  func.func @transform_1(%arg0: i32, %arg1: i32) -> (i32, i32, i32) {
    %c0_i32 = arith.constant 0 : i32
    %c0_i32_0 = arith.constant 0 : i32
    return %arg0, %c0_i32, %arg1 : i32, i32, i32
  }
  func.func @transform_2(%arg0: i32, %arg1: i32) -> (i32, i32, i32) {
    %c0_i32 = arith.constant 0 : i32
    %c0_i32_0 = arith.constant 0 : i32
    return %arg0, %c0_i32, %arg1 : i32, i32, i32
  }
  func.func @transform_3(%arg0: i32, %arg1: i32) -> (i32, i32, i32) {
    %c0_i32 = arith.constant 0 : i32
    %c0_i32_0 = arith.constant 0 : i32
    return %arg0, %c0_i32, %arg1 : i32, i32, i32
  }
  func.func @transform_4(%arg0: i32, %arg1: i32) -> (i32, i32) {
    %c0_i32 = arith.constant 0 : i32
    %c0_i32_0 = arith.constant 0 : i32
    %c0_i32_1 = arith.constant 0 : i32
    return %c0_i32, %c0_i32_0 : i32, i32
  }
  func.func @transform_5(%arg0: i32, %arg1: i32) -> (i32, i32, i32) {
    %c0_i32 = arith.constant 0 : i32
    %c0_i32_0 = arith.constant 0 : i32
    %c0_i32_1 = arith.constant 0 : i32
    return %arg0, %c0_i32, %c0_i32_0 : i32, i32, i32
  }
}

</mosaic_0001>

<bundles_post_ra>
// kernel: tpu_custom_call.1
= control target key start
LH: loop header
LB: loop body
LE: loop exit
PB: predicated region body
PF: predicated region fallthrough
CT: control target
= control target key end

     0   :  { %10 = vsyncpa [#allocation3], 0  ;;  %s3497_s0 = inlined_call_operand.vmem [shape: f32[2,25,1024], index: 0, kind: input, shape index: {}]   ;;  %s3498_s1 = inlined_call_operand.vmem [shape: f32[2,2,1024], index: 1, kind: input, shape index: {}]   ;;  %s3499_s2 = inlined_call_operand.vmem [shape: f32[2,1,1024], index: 2, kind: input, shape index: {}]   ;;  %s3500_s3 = inlined_call_operand.vmem [shape: f32[2,1,1024], index: 3, kind: input, shape index: {}]   ;;  %s3501_s4 = inlined_call_operand.vmem [shape: f32[25,2], index: 4, kind: input, shape index: {}]   ;;  %s3502_s5 = inlined_call_operand.hbm [shape: f32[2,8,1024], index: 5, kind: output, shape index: {}]  }
   0x1   :  { %12 = vsyncpa [#allocation3 + $0x1], 0  ;;  %s2409_s18 = smov 0   ;;  %s2411_s19 = smov 0  }
   0x2   :  { %s2413_s20 = smov 0   ;;  %s2415_s21 = smov 0  }
   0x3   :  { %s2417_s22 = smov 0   ;;  %s2419_s23 = smov 0  }
   0x4 LB: > { %s2072_s24 = sadd.s32 4294967295, %s2373_s23   ;;  %s2073_s25 = sadd.s32 4294967294, %s2373_s23   ;;  %s2373_s23 = sphi %s2419_s23, %s18_s23   ;;  %s2369_s22 = sphi %s2417_s22, %s3578_s22   ;;  %s2365_s21 = sphi %s2415_s21, %s3577_s21   ;;  %s2361_s20 = sphi %s2413_s20, %s3576_s20   ;;  %s2357_s19 = sphi %s2411_s19, %s3575_s19   ;;  %s2353_s18 = sphi %s2409_s18, %s3574_s18  }
   0x5   : > { %s30_s26 = sadd.s32 1, %s2369_s22  ;;  %s170_s27 = sadd.s32 1, %s2361_s20 }
   0x6   : > { %p32_p0 = scmp.ge.s32.totalorder %s30_s26, 2  ;;  %p180_p1 = scmp.ne.s32.totalorder %s2361_s20, %s2357_s19 }
   0x7   : > { %p181_p2 = scmp.eq.s32.totalorder %s2072_s24, 1  ;;  %p186_p3 = scmp.ne.s32.totalorder %s2357_s19, %s2353_s18 }
   0x8   : > { %s3580_s26 = smov (%p32_p0, %s30_s26), 0  ;;  %p187_p5 = scmp.eq.s32.totalorder %s2073_s25, 1 }
   0x9   : > { %p2449_p4 = por %p181_p2, %p180_p1  ;;  %s167_s29 = ssub.s32 %s2369_s22, %s3580_s26 }
   0xa   : > { %p2076_p6 = scmp.ge.s32.totalorder %s2373_s23, 1  ;;  %p168_p7 = scmp.eq.s32.totalorder %s167_s29, 0 }
   0xb   : > { %p2456_p8 = por %p187_p5, %p186_p3  ;;  %p258_p9 = scmp.lt.s32.totalorder %s2373_s23, 3 }
   0xc   : > { %s2462_s6 = scalar_select %p168_p7, %s2361_s20, %s170_s27  }
   0xd   : > { %p259_p10 = pnand %p2076_p6, %p258_p9 }
   0xf   : > { %262 = sbr.rel (%p259_p10) target bundleno = 453 (0x1c5), region = 40 }
  0x16   : > { %p316_p11 = scmp.lt.s32.totalorder %s2365_s21, 1  ;;  %v429_v0 = vlaneseq  ;;  %v2468_v1 = vld [vmem:[%s3501_s4] sm:$0xff]  ;;  %v2375_v2 = vmov 1983009808   ;;  %v3503_v4 = vmov 0.0   ;;  %vm409_vm0 = vcmask 15360  }
  0x17   : > { %v427_v3 = vunpack.c.l.s4 %v2375_v2  ;;  %552 = vmatprep.mubr.f32.mxu0 %v3503_v4  ;;  %641 = vmatprep.mubr.f32.mxu1 %v3503_v4  ;;  %v2475_v5 = vld [vmem:[%s3501_s4 + $0x8] sm:$0xff]  ;;  %v2480_v6 = vld [vmem:[%s3501_s4 + $0x10] sm:$0xff]  ;;  %v2485_v7 = vld [vmem:[%s3501_s4 + $0x18] sm:$0x1]  ;;  %v405_v8 = vmul.f32 %v2468_v1, %v2468_v1  ;;  %vm419_vm1 = vcmask 8192   ;;  %vm471_vm2 = vcmask 1041408  }
  0x18   : > { %s2490_s15 = scalar_select %p316_p11, %s2365_s21, 1  ;;  %v2492_v9 = vshrl.u32 %v429_v0, 7  ;;  %v406_v10 = vmul.f32 %v2475_v5, %v2475_v5  ;;  %v407_v11 = vmul.f32 %v2480_v6, %v2480_v6  ;;  %v408_v12 = vmul.f32 %v2485_v7, %v2485_v7 }
  0x19   : > { %v428_v13 = vunpack.c.0.s8 %v427_v3  ;;  %v410_v14 = vsel %vm409_vm0, %v405_v8, 0.0  ;;  %vm910_vm3 = vcmask 1040384   ;;  %s2116_s24 = sshll.u32 %s2365_s21, 10  ;;  %s2378_s10 = smov [#allocation2]  }
  0x1a   : > { %s2115_s16 = sshll.u32 %s2490_s15, 4  ;;  %411 = vadd.xlane.f32.xlu0 %v410_v14  ;;  %v416_v15 = vsel %vm409_vm0, %v407_v11, 0.0  ;;  %v413_v17 = vsel %vm409_vm0, %v406_v10, 0.0  ;;  %v420_v20 = vsel %vm419_vm1, %v408_v12, 0.0  ;;  %s2114_s27 = sshll.u32 %s2490_s15, 8 }
  0x1b   : > { %s333_s25 = scalar_lea.vmem %s3498_s1, %s2115_s16  ;;  %v431_v16 = vsub.s32 %v428_v13, %v2492_v9  ;;  %417 = vadd.xlane.f32.xlu1 %v416_v15  ;;  %s2566_s8 = scalar_lea.vmem %s3497_s0, %s2114_s27 }
  0x1c   : > { %v397_v18 = vld [vmem:[%s333_s25] sm:$0xff]  ;;  %v398_v19 = vld [vmem:[%s333_s25 + $0x8] sm:$0xff]  ;;  %v2597_v46 = vld [vmem:[%s2566_s8 + $0x10] sm:$0xff]  ;;  %s2082_s9 = sshll.u32 %s2490_s15, 3  ;;  %s312_s16 = sand.u32 1, %s2357_s19  }
  0x1d   : > { %v432_v21 = vrot.slane %v397_v18, %v431_v16  ;;  %v442_v22 = vcombine.high %v398_v19, %v398_v19  ;;  %v449_v23 = vrot.slane %v398_v19, %v431_v16  ;;  %v425_v24 = vcombine.high %v397_v18, %v397_v18  ;;  %v365_v31 = vld [vmem:[%s2566_s8] sm:$0xff]  ;;  %v366_v33 = vld [vmem:[%s2566_s8 + $0x8] sm:$0xff]  ;;  %v2600_v47 = vld [vmem:[%s2566_s8 + $0x50] sm:$0xff]  ;;  %s2767_s12 = scalar_lea.vmem %s3499_s2, %s2082_s9  ;;  %s2772_s15 = scalar_lea.vmem %s3500_s3, %s2082_s9 }
  0x1e   : > { %414 = vadd.xlane.f32.xlu0 %v413_v17  ;;  %v2570_v32 = vld [vmem:[%s2566_s8 + $0x40] sm:$0xff]  ;;  %v2574_v34 = vld [vmem:[%s2566_s8 + $0x48] sm:$0xff]  ;;  %v2603_v49 = vld [vmem:[%s2566_s8 + $0x90] sm:$0xff]  ;;  %v1350_v51 = vmax.f32 %v2597_v46, %v2600_v47  ;;  %s2077_s17 = sshll.u32 %s312_s16, 6  ;;  %s3448_s21 = scalar_lea.hbm %s3502_s5, %s2116_s24 }
  0x1f   : > { %v440_v25 = vcombine.high %v432_v21, %v432_v21  ;;  %421 = vadd.xlane.f32.xlu1 %v420_v20  ;;  %v439_v26 = vrot.slane %v425_v24, %v431_v16  ;;  %v457_v27 = vcombine.high %v449_v23, %v449_v23  ;;  %v456_v28 = vrot.slane %v442_v22, %v431_v16  ;;  %v2577_v35 = vld [vmem:[%s2566_s8 + $0x80] sm:$0xff]  ;;  %v2581_v37 = vld [vmem:[%s2566_s8 + $0x88] sm:$0xff]  ;;  %v2606_v50 = vld [vmem:[%s2566_s8 + $0xd0] sm:$0x1]  ;;  %s314_s25 = scalar_lea.vmem [#allocation2], %s2077_s17  ;;  %s2299_s11 = sshll.u32 %s2378_s10, 4  ;;  %s2300_s11 = int_to_ptr.vmem [resolvable:$false] %s2299_s11 }
  0x20   : > { %v1330_v36 = vmax.f32 %v365_v31, %v2570_v32  ;;  %v2584_v38 = vld [vmem:[%s2566_s8 + $0xc0] sm:$0x1]  ;;  %v1340_v39 = vmax.f32 %v366_v33, %v2574_v34  ;;  %v2588_v40 = vld [vmem:[%s2566_s8 + $0xc8] sm:$0x1]  ;;  %v1351_v54 = vmax.f32 %v1350_v51, %v2603_v49  ;;  %v1352_v55 = vsel %vm910_vm3, %v2606_v50, -inf  ;;  %v368_v62 = vld [vmem:[%s2566_s8 + $0x18] sm:$0xff] }
  0x21   : > { %2084 = vmatprep.subr.msk.mxu0 %vm471_vm2, %v440_v25  ;;  %v441_v29 = vcombine.high %v439_v26, %v439_v26  ;;  %v458_v30 = vcombine.high %v456_v28, %v456_v28  ;;  %v1332_v42 = vsel %vm910_vm3, %v2584_v38, -inf  ;;  %v1342_v44 = vsel %vm910_vm3, %v2588_v40, -inf  ;;  %v376_v63 = vld [vmem:[%s2566_s8 + $0x58] sm:$0xff]  ;;  %s1951_s27 = sshll.u32 %s314_s25, 4  ;;  %s3450_s27 = int_to_ptr.vmem [resolvable:$true] %s1951_s27 }
  0x22   : > { %2085 = vmatpush1.msk.msra.mxu0 %vm471_vm2, %v432_v21  ;;  %v1331_v41 = vmax.f32 %v1330_v36, %v2577_v35  ;;  %v1341_v43 = vmax.f32 %v1340_v39, %v2581_v37  ;;  %v1353_v56 = vmax.f32 %v1351_v54, %v1352_v55  ;;  %v2616_v0 = vld [vmem:[%s2566_s8 + $0xd8] sm:$0x1]  ;;  %s2295_s9 = scalar_lea.vmem %s3450_s27, 1024  ;;  %p2302_p1 = scmp.lt.s32.totalorder %s3450_s27, %s2300_s11 }
  0x23   : > { %2086 = vmatmul.mubr.msk.f32.vlgmr.msra.gmra.mrb[0].mxu0 %vm409_vm0, %v2468_v1  ;;  %2096 = vmatprep.subr.msk.mxu0 %vm471_vm2, %v457_v27  ;;  %v2619_v2 = vld [vmem:[%s2566_s8 + $0x98] sm:$0xff]  ;;  %p2296_p12 = scmp.ne.s32.totalorder %s3450_s27, %s2295_s9 }
  0x24   : > { %2090 = vmatprep.subr.msk.mxu1 %vm471_vm2, %v441_v29  ;;  %558 = vmatprep.mubr.f32.mxu0 %v3503_v4  ;;  %v1333_v45 = vmax.f32 %v1331_v41, %v1332_v42  ;;  %v1343_v48 = vmax.f32 %v1341_v43, %v1342_v44  ;;  %v1354_v59 = vrot.slane %v1353_v56, 4 }
  0x25   : > { %2091 = vmatpush1.msk.msra.mxu1 %vm471_vm2, %v439_v26  ;;  %2097 = vmatpush1.msk.msra.mxu0 %vm471_vm2, %v449_v23  ;;  %p2297_p13 = pnand %p2296_p12, %p2449_p4 }
  0x26   : > { %2092 = vmatmul.mubr.msk.f32.vlgmr.msra.gmra.mrb[0].mxu1 %vm409_vm0, %v2468_v1  ;;  %2102 = vmatprep.subr.msk.mxu1 %vm471_vm2, %v458_v30  ;;  %v1334_v52 = vrot.slane %v1333_v45, 4  ;;  %v1344_v53 = vrot.slane %v1343_v48, 4 }
  0x27   : > { %2103 = vmatpush1.msk.msra.mxu1 %vm471_vm2, %v456_v28  ;;  %2087 = vmatmul.mubr.msk.f32.gmra.mrb[2].mxu0 %vm409_vm0, %v2475_v5  ;;  %p2298_p0 = pneg %p2297_p13 }
  0x28   : > { %647 = vmatprep.mubr.f32.mxu1 %v3503_v4  ;;  %564 = vmatprep.mubr.f32.mxu0 %v3503_v4  ;;  %v1335_v57 = vmax.f32 %v1333_v45, %v1334_v52  ;;  %v1345_v58 = vmax.f32 %v1343_v48, %v1344_v53  ;;  %v2657_v52 = vld [vmem:[%s2566_s8 + $0x20] sm:$0xff] }
  0x29   : > { %v2660_v53 = vld [vmem:[%s2566_s8 + $0x60] sm:$0xff] }
  0x2a   : > { %2093 = vmatmul.mubr.msk.f32.gmra.mrb[2].mxu1 %vm409_vm0, %v2475_v5  ;;  %v1336_v60 = vrot.slane %v1335_v57, 2  ;;  %v1346_v61 = vrot.slane %v1345_v58, 2 }
  0x2b   : > { %2088 = vmatmul.mubr.msk.f32.gmra.mrb[4].mxu0 %vm409_vm0, %v2480_v6  ;;  %653 = vmatprep.mubr.f32.mxu1 %v3503_v4 }
  0x2c   : > { %570 = vmatprep.mubr.f32.mxu0 %v3503_v4  ;;  %v1337_v3 = vmax.f32 %v1335_v57, %v1336_v60 }
  0x2e   : > { %2094 = vmatmul.mubr.msk.f32.gmra.mrb[4].mxu1 %vm409_vm0, %v2480_v6  ;;  %v1338_v11 = vrot.slane %v1337_v3, 1 }
  0x2f   : > { %2089 = vmatmul.mubr.msk.f32.gmra.mrb[6].mxu0 %vm409_vm0, %v2485_v7  ;;  %659 = vmatprep.mubr.f32.mxu1 %v3503_v4 }
  0x30   : > { %730 = vmatprep.mubr.f32.mxu0 %v3503_v4  ;;  %v2624_v16 = vmax.f32 %v1337_v3, %v1338_v11  ;;  %v2681_v11 = vld [vmem:[%s2566_s8 + $0x68] sm:$0xff] }
  0x32   : > { %2095 = vmatmul.mubr.msk.f32.gmra.mrb[6].mxu1 %vm409_vm0, %v2485_v7  ;;  %v1410_v21 = vsub.f32 %v365_v31, %v2624_v16  ;;  %v1418_v24 = vsub.f32 %v2570_v32, %v2624_v16  ;;  %v1426_v28 = vsub.f32 %v2577_v35, %v2624_v16 }
  0x33   : > { %2098 = vmatmul.mubr.msk.f32.vlgmr.msra.gmra.mrb[8].mxu0 %vm409_vm0, %v2468_v1  ;;  %819 = vmatprep.mubr.f32.mxu1 %v3503_v4 }
  0x34   : > { %736 = vmatprep.mubr.f32.mxu0 %v3503_v4  ;;  %v1442_v29 = vmul.f32 1.442695, %v1410_v21  ;;  %v1458_v32 = vmul.f32 1.442695, %v1418_v24  ;;  %v1474_v41 = vmul.f32 1.442695, %v1426_v28 }
  0x35   : > { %v2687_v21 = vld [vmem:[%s2566_s8 + $0xe8] sm:$0x1] }
  0x36   : > { %2104 = vmatmul.mubr.msk.f32.vlgmr.msra.gmra.mrb[8].mxu1 %vm409_vm0, %v2468_v1  ;;  %v1355_v1 = vmax.f32 %v1353_v56, %v1354_v59  ;;  %2177 = vpow2.f32 %v1442_v29  ;;  %v2667_v56 = vld [vmem:[%s2566_s8 + $0xa0] sm:$0xff] }
  0x37   : > { %2099 = vmatmul.mubr.msk.f32.gmra.mrb[10].mxu0 %vm409_vm0, %v2475_v5  ;;  %825 = vmatprep.mubr.f32.mxu1 %v3503_v4 }
  0x38   : > { %742 = vmatprep.mubr.f32.mxu0 %v3503_v4  ;;  %v1356_v10 = vrot.slane %v1355_v1, 2 }
  0x3a   : > { %2105 = vmatmul.mubr.msk.f32.gmra.mrb[10].mxu1 %vm409_vm0, %v2475_v5  ;;  %v1360_v5 = vmax.f32 %v368_v62, %v376_v63  ;;  %v1357_v15 = vmax.f32 %v1355_v1, %v1356_v10  ;;  %v2678_v10 = vld [vmem:[%s2566_s8 + $0x28] sm:$0xff] }
  0x3b   : > { %2100 = vmatmul.mubr.msk.f32.gmra.mrb[12].mxu0 %vm409_vm0, %v2480_v6  ;;  %831 = vmatprep.mubr.f32.mxu1 %v3503_v4 }
  0x3c   : > { %748 = vmatprep.mubr.f32.mxu0 %v3503_v4  ;;  %v1361_v8 = vmax.f32 %v1360_v5, %v2619_v2  ;;  %v1358_v20 = vrot.slane %v1357_v15, 1 }
  0x3e   : > { %2106 = vmatmul.mubr.msk.f32.gmra.mrb[12].mxu1 %vm409_vm0, %v2480_v6  ;;  %v1347_v6 = vmax.f32 %v1345_v58, %v1346_v61  ;;  %v2634_v27 = vmax.f32 %v1357_v15, %v1358_v20  ;;  %v1370_v58 = vmax.f32 %v2657_v52, %v2660_v53 }
  0x3f   : > { %2101 = vmatmul.mubr.msk.f32.gmra.mrb[14].mxu0 %vm409_vm0, %v2485_v7  ;;  %837 = vmatprep.mubr.f32.mxu1 %v3503_v4 }
  0x40   : > { %v1348_v13 = vrot.slane %v1347_v6, 1  ;;  %v1420_v35 = vsub.f32 %v2600_v47, %v2634_v27  ;;  %v1436_v48 = vsub.f32 %v2606_v50, %v2634_v27  ;;  %v2670_v50 = vld [vmem:[%s2566_s8 + $0xe0] sm:$0x1]  ;;  %v2178_v60 = vpop.eup %2177 }
  0x41   : > { %v1372_v1 = vsel %vm910_vm3, %v2670_v50, -inf }
  0x42   : > { %2107 = vmatmul.mubr.msk.f32.gmra.mrb[14].mxu1 %vm409_vm0, %v2485_v7  ;;  %v1362_v7 = vsel %vm910_vm3, %v2616_v0, -inf  ;;  %v2626_v18 = vmax.f32 %v1347_v6, %v1348_v13  ;;  %v1462_v47 = vmul.f32 1.442695, %v1420_v35  ;;  %v1494_v59 = vmul.f32 1.442695, %v1436_v48 }
  0x43   : > { %v1363_v12 = vmax.f32 %v1361_v8, %v1362_v7 }
  0x44   : > { %v1411_v23 = vsub.f32 %v366_v33, %v2626_v18  ;;  %v1419_v26 = vsub.f32 %v2574_v34, %v2626_v18  ;;  %v1427_v30 = vsub.f32 %v2581_v37, %v2626_v18  ;;  %v1434_v33 = vsub.f32 %v2584_v38, %v2624_v16 }
  0x45   : > { %v1364_v14 = vrot.slane %v1363_v12, 4  ;;  %v1412_v34 = vsub.f32 %v2597_v46, %v2634_v27  ;;  %v1435_v44 = vsub.f32 %v2588_v40, %v2626_v18  ;;  %v1428_v46 = vsub.f32 %v2603_v49, %v2634_v27 }
  0x46   : > { %v1444_v31 = vmul.f32 1.442695, %v1411_v23  ;;  %v1460_v39 = vmul.f32 1.442695, %v1419_v26  ;;  %v1476_v37 = vmul.f32 1.442695, %v1427_v30 }
  0x47   : > { %v1365_v17 = vmax.f32 %v1363_v12, %v1364_v14  ;;  %v1490_v43 = vmul.f32 1.442695, %v1434_v33  ;;  %v1446_v45 = vmul.f32 1.442695, %v1412_v34  ;;  %v1492_v55 = vmul.f32 1.442695, %v1435_v44 }
  0x48   : > { %2179 = vpow2.f32 %v1444_v31  ;;  %v1478_v57 = vmul.f32 1.442695, %v1428_v46  ;;  %v1382_v31 = vsel %vm910_vm3, %v2687_v21, -inf  ;;  %v2698_v44 = vld [vmem:[%s2566_s8 + $0x30] sm:$0xff] }
  0x49   : > { %v1366_v19 = vrot.slane %v1365_v17, 2  ;;  %2181 = vpow2.f32 %v1458_v32 }
  0x4a   : > { %2183 = vpow2.f32 %v1460_v39 }
  0x4b   : > { %v1367_v22 = vmax.f32 %v1365_v17, %v1366_v19  ;;  %2185 = vpow2.f32 %v1474_v41  ;;  %v2684_v17 = vld [vmem:[%s2566_s8 + $0xa8] sm:$0xff] }
  0x4c   : > { %2187 = vpow2.f32 %v1476_v37 }
  0x4d   : > { %v1368_v25 = vrot.slane %v1367_v22, 1  ;;  %2189 = vpow2.f32 %v1490_v43 }
  0x4e   : > { %2191 = vpow2.f32 %v1446_v45  ;;  %v2701_v45 = vld [vmem:[%s2566_s8 + $0x70] sm:$0xff] }
  0x4f   : > { %v2640_v36 = vmax.f32 %v1367_v22, %v1368_v25  ;;  %2193 = vpow2.f32 %v1462_v47  ;;  %v1380_v22 = vmax.f32 %v2678_v10, %v2681_v11 }
  0x51   : > { %v1413_v42 = vsub.f32 %v368_v62, %v2640_v36  ;;  %v1421_v38 = vsub.f32 %v376_v63, %v2640_v36  ;;  %v1429_v40 = vsub.f32 %v2619_v2, %v2640_v36  ;;  %v1437_v49 = vsub.f32 %v2616_v0, %v2640_v36 }
  0x52   : > { %v1371_v62 = vmax.f32 %v1370_v58, %v2667_v56  ;;  %v2180_v63 = vpop.eup %2179  ;;  %v1381_v26 = vmax.f32 %v1380_v22, %v2684_v17 }
  0x53   : > { %v1448_v51 = vmul.f32 1.442695, %v1413_v42  ;;  %v1464_v54 = vmul.f32 1.442695, %v1421_v38  ;;  %v1480_v61 = vmul.f32 1.442695, %v1429_v40  ;;  %v2182_v2 = vpop.eup %2181 }
  0x54   : > { %v1496_v0 = vmul.f32 1.442695, %v1437_v49  ;;  %v1373_v3 = vmax.f32 %v1371_v62, %v1372_v1  ;;  %v2184_v5 = vpop.eup %2183  ;;  %v1506_v15 = vadd.f32 %v2182_v2, %v2178_v60  ;;  %v1383_v34 = vmax.f32 %v1381_v26, %v1382_v31  ;;  %v2709_v49 = vld [vmem:[%s2566_s8 + $0xb0] sm:$0xff] }
  0x55   : > { %2195 = vpow2.f32 %v1448_v51  ;;  %v2186_v6 = vpop.eup %2185  ;;  %v1516_v30 = vadd.f32 %v2184_v5, %v2180_v63 }
  0x56   : > { %2197 = vpow2.f32 %v1464_v54  ;;  %v1374_v7 = vrot.slane %v1373_v3, 4  ;;  %v2188_v8 = vpop.eup %2187  ;;  %v1507_v29 = vadd.f32 %v2186_v6, %v1506_v15  ;;  %v1384_v38 = vrot.slane %v1383_v34, 4 }
  0x57   : > { %2199 = vpow2.f32 %v1492_v55  ;;  %v2190_v12 = vpop.eup %2189  ;;  %v1517_v48 = vadd.f32 %v2188_v8, %v1516_v30 }
  0x58   : > { %2201 = vpow2.f32 %v1478_v57  ;;  %v1375_v13 = vmax.f32 %v1373_v3, %v1374_v7  ;;  %v2192_v14 = vpop.eup %2191  ;;  %v1508_v32 = vsel %vm910_vm3, %v2190_v12, 0.0  ;;  %v1385_v55 = vmax.f32 %v1383_v34, %v1384_v38  ;;  %v2712_v57 = vld [vmem:[%s2566_s8 + $0xf0] sm:$0x1] }
  0x59   : > { %2203 = vpow2.f32 %v1494_v59  ;;  %v2194_v19 = vpop.eup %2193  ;;  %v1509_v47 = vadd.f32 %v1508_v32, %v1507_v29  ;;  %v1392_v3 = vsel %vm910_vm3, %v2712_v57, -inf }
  0x5a   : > { %2205 = vpow2.f32 %v1480_v61  ;;  %v1376_v20 = vrot.slane %v1375_v13, 2  ;;  %v1526_v35 = vadd.f32 %v2194_v19, %v2192_v14  ;;  %v1390_v61 = vmax.f32 %v2698_v44, %v2701_v45 }
  0x5b   : > { %2207 = vpow2.f32 %v1496_v0  ;;  %v1386_v1 = vrot.slane %v1385_v55, 2 }
  0x5c   : > { %v1377_v25 = vmax.f32 %v1375_v13, %v1376_v20  ;;  %v1391_v2 = vmax.f32 %v1390_v61, %v2709_v49 }
  0x5d   : > { %v1387_v7 = vmax.f32 %v1385_v55, %v1386_v1 }
  0x5e   : > { %v1378_v39 = vrot.slane %v1377_v25, 1  ;;  %v1393_v13 = vmax.f32 %v1391_v2, %v1392_v3 }
  0x5f   : > { %v2196_v23 = vpop.eup %2195  ;;  %v1388_v15 = vrot.slane %v1387_v7, 1 }
  0x60   : > { %v2198_v24 = vpop.eup %2197  ;;  %v2695_v43 = vmax.f32 %v1377_v25, %v1378_v39  ;;  %v1394_v20 = vrot.slane %v1393_v13, 4 }
  0x61   : > { %v2200_v28 = vpop.eup %2199  ;;  %v1536_v37 = vadd.f32 %v2198_v24, %v2196_v23  ;;  %v2725_v22 = vmax.f32 %v1387_v7, %v1388_v15 }
  0x62   : > { %v2202_v33 = vpop.eup %2201  ;;  %3529 = vst [vmem:[#allocation5_spill] sm:$0xff] %v2695_v43  ;;  %v1518_v51 = vsel %vm910_vm3, %v2200_v28, 0.0  ;;  %v1414_v40 = vsub.f32 %v2657_v52, %v2695_v43  ;;  %v1422_v54 = vsub.f32 %v2660_v53, %v2695_v43  ;;  %v1430_v52 = vsub.f32 %v2667_v56, %v2695_v43 }
  0x63   : > { %v2204_v41 = vpop.eup %2203  ;;  %v1527_v58 = vadd.f32 %v2202_v33, %v1526_v35  ;;  %v1438_v53 = vsub.f32 %v2670_v50, %v2695_v43  ;;  %v1519_v5 = vadd.f32 %v1518_v51, %v1517_v48  ;;  %v1510_v56 = vrot.slane %v1509_v47, 4  ;;  %3530 = vst [vmem:[#allocation6_spill] sm:$0xff] %v2725_v22  ;;  %v2736_v48 = vld [vmem:[%s2566_s8 + $0x38] sm:$0xff] }
  0x64   : > { %v2206_v42 = vpop.eup %2205  ;;  %v1528_v59 = vsel %vm910_vm3, %v2204_v41, 0.0  ;;  %v1450_v63 = vmul.f32 1.442695, %v1414_v40  ;;  %v1466_v0 = vmul.f32 1.442695, %v1422_v54  ;;  %v1395_v24 = vmax.f32 %v1393_v13, %v1394_v20  ;;  %v2739_v51 = vld [vmem:[%s2566_s8 + $0x78] sm:$0xff] }
  0x65   : > { %v2208_v46 = vpop.eup %2207  ;;  %v1537_v60 = vadd.f32 %v2206_v42, %v1536_v37  ;;  %v1529_v6 = vadd.f32 %v1528_v59, %v1527_v58  ;;  %v1482_v12 = vmul.f32 1.442695, %v1430_v52  ;;  %v1498_v14 = vmul.f32 1.442695, %v1438_v53  ;;  %v2742_v59 = vld [vmem:[%s2566_s8 + $0xb8] sm:$0xff] }
  0x66   : > { %v1538_v62 = vsel %vm910_vm3, %v2208_v46, 0.0  ;;  %2209 = vpow2.f32 %v1450_v63  ;;  %v1520_v19 = vrot.slane %v1519_v5, 4  ;;  %v1511_v25 = vadd.f32 %v1510_v56, %v1509_v47 }
  0x67   : > { %v1539_v8 = vadd.f32 %v1538_v62, %v1537_v60  ;;  %2211 = vpow2.f32 %v1466_v0  ;;  %v1530_v50 = vrot.slane %v1529_v6, 4  ;;  %v1415_v26 = vsub.f32 %v2678_v10, %v2725_v22  ;;  %v2745_v62 = vld [vmem:[%s2566_s8 + $0xf8] sm:$0x1] }
  0x68   : > { %2213 = vpow2.f32 %v1482_v12  ;;  %v1423_v28 = vsub.f32 %v2681_v11, %v2725_v22  ;;  %v1521_v29 = vadd.f32 %v1520_v19, %v1519_v5  ;;  %v1396_v30 = vrot.slane %v1395_v24, 2 }
  0x69   : > { %v1540_v23 = vrot.slane %v1539_v8, 4  ;;  %2215 = vpow2.f32 %v1498_v14  ;;  %v1531_v31 = vadd.f32 %v1530_v50, %v1529_v6  ;;  %v1431_v33 = vsub.f32 %v2684_v17, %v2725_v22 }
  0x6a   : > { %v1452_v32 = vmul.f32 1.442695, %v1415_v26  ;;  %v1468_v39 = vmul.f32 1.442695, %v1423_v28  ;;  %v1439_v41 = vsub.f32 %v2687_v21, %v2725_v22  ;;  %v1512_v37 = vrot.slane %v1511_v25, 2 }
  0x6b   : > { %v1541_v34 = vadd.f32 %v1540_v23, %v1539_v8  ;;  %v1397_v10 = vmax.f32 %v1395_v24, %v1396_v30  ;;  %v1522_v11 = vrot.slane %v1521_v29, 2  ;;  %v1532_v38 = vrot.slane %v1531_v31, 2 }
  0x6c   : > { %2217 = vpow2.f32 %v1452_v32  ;;  %v1484_v46 = vmul.f32 1.442695, %v1431_v33  ;;  %v1500_v47 = vmul.f32 1.442695, %v1439_v41  ;;  %v1513_v40 = vadd.f32 %v1512_v37, %v1511_v25  ;;  %v400_v37 = vld [vmem:[%s2772_s15] sm:$0xff] }
  0x6d   : > { %2219 = vpow2.f32 %v1468_v39  ;;  %v1542_v17 = vrot.slane %v1541_v34, 2  ;;  %v1398_v21 = vrot.slane %v1397_v10, 1  ;;  %v1523_v58 = vadd.f32 %v1522_v11, %v1521_v29 }
  0x6e   : > { %v1533_v61 = vadd.f32 %v1532_v38, %v1531_v31  ;;  %2221 = vpow2.f32 %v1484_v46  ;;  %v1400_v52 = vmax.f32 %v2736_v48, %v2739_v51  ;;  %v1514_v0 = vrot.slane %v1513_v40, 1 }
  0x6f   : > { %v1543_v63 = vadd.f32 %v1542_v17, %v1541_v34  ;;  %2223 = vpow2.f32 %v1500_v47  ;;  %v2749_v1 = vmax.f32 %v1397_v10, %v1398_v21  ;;  %v1524_v3 = vrot.slane %v1523_v58, 1 }
  0x70   : > { %v2210_v35 = vpop.eup %2209  ;;  %v1401_v2 = vmax.f32 %v1400_v52, %v2742_v59  ;;  %v1402_v6 = vsel %vm910_vm3, %v2745_v62, -inf  ;;  %v1534_v7 = vrot.slane %v1533_v61, 1  ;;  %v1515_v56 = vadd.f32 %v1514_v0, %v1513_v40 }
  0x71   : > { %v2212_v42 = vpop.eup %2211  ;;  %3531 = vst [vmem:[#allocation7_spill] sm:$0xff] %v2749_v1  ;;  %v1544_v12 = vrot.slane %v1543_v63, 1  ;;  %v1416_v15 = vsub.f32 %v2698_v44, %v2749_v1  ;;  %v1525_v20 = vadd.f32 %v1524_v3, %v1523_v58  ;;  %v1424_v50 = vsub.f32 %v2701_v45, %v2749_v1 }
  0x72   : > { %v1546_v54 = vadd.f32 %v2212_v42, %v2210_v35  ;;  %v2214_v55 = vpop.eup %2213  ;;  %v1403_v19 = vmax.f32 %v1401_v2, %v1402_v6  ;;  %v1535_v23 = vadd.f32 %v1534_v7, %v1533_v61  ;;  %2225 = vlog2.f32 %v1515_v56  ;;  %v399_v35 = vld [vmem:[%s2767_s12] sm:$0xff] }
  0x73   : > { %v2216_v60 = vpop.eup %2215  ;;  %v1545_v24 = vadd.f32 %v1544_v12, %v1543_v63  ;;  %v1454_v29 = vmul.f32 1.442695, %v1416_v15  ;;  %2227 = vlog2.f32 %v1525_v20  ;;  %v1432_v33 = vsub.f32 %v2709_v49, %v2749_v1 }
  0x74   : > { %v1547_v53 = vadd.f32 %v2214_v55, %v1546_v54  ;;  %v1548_v5 = vsel %vm910_vm3, %v2216_v60, 0.0  ;;  %v1404_v30 = vrot.slane %v1403_v19, 4  ;;  %v1470_v44 = vmul.f32 1.442695, %v1424_v50 }
  0x75   : > { %2229 = vlog2.f32 %v1535_v23  ;;  %v1440_v32 = vsub.f32 %v2712_v57, %v2749_v1  ;;  %v1486_v57 = vmul.f32 1.442695, %v1432_v33  ;;  %vm1618_vm4 = vcmp.gt.f32.partialorder %v399_v35, 0.99 }
  0x76   : > { %v2218_v8 = vpop.eup %2217  ;;  %v1549_v14 = vadd.f32 %v1548_v5, %v1547_v53  ;;  %2231 = vlog2.f32 %v1545_v24  ;;  %v1405_v34 = vmax.f32 %v1403_v19, %v1404_v30  ;;  %v1624_v46 = vand.u32 2147483647, %v400_v37 }
  0x77   : > { %v2220_v13 = vpop.eup %2219  ;;  %2233 = vpow2.f32 %v1454_v29  ;;  %v1502_v41 = vmul.f32 1.442695, %v1440_v32  ;;  %v2778_v54 = vsub.s32 0, %v2492_v9  ;;  %v2781_v60 = vsel %vm1618_vm4, 1.0, %v3503_v4 }
  0x78   : > { %v1556_v25 = vadd.f32 %v2220_v13, %v2218_v8  ;;  %v2222_v26 = vpop.eup %2221  ;;  %v1550_v28 = vrot.slane %v1549_v14, 4  ;;  %2235 = vpow2.f32 %v1470_v44  ;;  %v1406_v11 = vrot.slane %v1405_v34, 2  ;;  %3533 = vst [vmem:[#allocation9_spill] sm:$0xff] %v2781_v60 }
  0x79   : > { %v2224_v31 = vpop.eup %2223  ;;  %2237 = vpow2.f32 %v1486_v57  ;;  %3532 = vst [vmem:[#allocation8_spill] sm:$0xff] %v2778_v54  ;;  %v2784_v61 = vsub.s32 1, %v2492_v9  ;;  %v1625_v63 = vsub.f32 0.0, %v1624_v46  ;;  %v2377_v2 = vmov 1966171168  }
  0x7a   : > { %v1557_v45 = vadd.f32 %v2222_v26, %v1556_v25  ;;  %v1551_v49 = vadd.f32 %v1550_v28, %v1549_v14  ;;  %v1558_v39 = vsel %vm910_vm3, %v2224_v31, 0.0  ;;  %2239 = vpow2.f32 %v1502_v41 }
  0x7b   : > { %v1407_v55 = vmax.f32 %v1405_v34, %v1406_v11  ;;  %3534 = vst [vmem:[#allocation10_spill] sm:$0xff] %v2784_v61  ;;  %v1716_v3 = vunpack.c.l.s4 %v2377_v2  ;;  %v2790_v6 = vrot.slane %v2781_v60, %v2778_v54  ;;  %v2794_v13 = vrot.slane %v2781_v60, %v2784_v61 }
  0x7c   : > { %v1559_v10 = vadd.f32 %v1558_v39, %v1557_v45  ;;  %v1552_v42 = vrot.slane %v1551_v49, 2  ;;  %v2226_v38 = vpop.eup %2225  ;;  %v2797_v15 = vsub.s32 2, %v2492_v9  ;;  %v2799_v19 = vmul.f32 1.442695, %v1625_v63 }
  0x7d   : > { %v2228_v17 = vpop.eup %2227  ;;  %3535 = vst [vmem:[#allocation11_spill] sm:$0xff] %v2790_v6  ;;  %v1587_v7 = vmul.f32 0.6931472, %v2226_v38  ;;  %v1408_v12 = vrot.slane %v1407_v55, 1  ;;  %3536 = vst [vmem:[#allocation12_spill] sm:$0xff] %v2794_v13  ;;  %v2802_v23 = vsub.s32 3, %v2492_v9  ;;  %v1717_v30 = vunpack.c.0.s8 %v1716_v3 }
  0x7e   : > { %v1560_v47 = vrot.slane %v1559_v10, 4  ;;  %v1553_v21 = vadd.f32 %v1552_v42, %v1551_v49  ;;  %v1589_v56 = vmul.f32 0.6931472, %v2228_v17  ;;  %3537 = vst [vmem:[#allocation13_spill] sm:$0xff] %v2797_v15  ;;  %3538 = vst [vmem:[#allocation14_spill] sm:$0xff] %v2799_v19  ;;  %v2805_v28 = vadd.s32 8, %v2492_v9 }
  0x7f   : > { %v2230_v40 = vpop.eup %2229  ;;  %3539 = vst [vmem:[#allocation15_spill] sm:$0xff] %v2802_v23  ;;  %v2808_v29 = vadd.s32 16, %v2492_v9  ;;  %v2811_v44 = vadd.s32 24, %v2492_v9  ;;  %v2814_v32 = vadd.f32 %v1587_v7, %v2624_v16  ;;  %v2816_v49 = vmax.f32 %v1407_v55, %v1408_v12 }
  0x80   : > { %v2232_v58 = vpop.eup %2231  ;;  %v1561_v5 = vadd.f32 %v1560_v47, %v1559_v10  ;;  %v1554_v8 = vrot.slane %v1553_v21, 1  ;;  %v1591_v14 = vmul.f32 0.6931472, %v2230_v40  ;;  %v2821_v41 = vadd.f32 %v1589_v56, %v2626_v18 }
  0x81   : > { %v2234_v52 = vpop.eup %2233  ;;  %v1593_v50 = vmul.f32 0.6931472, %v2232_v58  ;;  %v2828_v37 = vrot.slane %v2781_v60, %v2797_v15  ;;  %v2835_v38 = vrot.slane %v2781_v60, %v2802_v23  ;;  %v1425_v3 = vsub.f32 %v2739_v51, %v2816_v49 }
  0x82   : > { %v2236_v0 = vpop.eup %2235  ;;  %v1562_v31 = vrot.slane %v1561_v5, 2  ;;  %v1555_v45 = vadd.f32 %v1554_v8, %v1553_v21  ;;  %v2824_v35 = vadd.f32 %v1591_v14, %v2634_v27  ;;  %v2840_v27 = vsub.s32 %v1717_v30, %v2492_v9 }
  0x83   : > { %v1566_v24 = vadd.f32 %v2236_v0, %v2234_v52  ;;  %v2238_v25 = vpop.eup %2237  ;;  %3540 = vst [vmem:[#allocation16_spill] sm:$0xff] %v2828_v37  ;;  %v2831_v11 = vadd.f32 %v1593_v50, %v2640_v36  ;;  %3542 = vst [vmem:[#allocation18_spill] sm:$0xff] %v2835_v38  ;;  %v1417_v36 = vsub.f32 %v2736_v48, %v2816_v49 }
  0x84   : > { %v2240_v33 = vpop.eup %2239  ;;  %3543 = vst [vmem:[#allocation19_spill] sm:$0xff] %v2840_v27  ;;  %v1563_v40 = vadd.f32 %v1562_v31, %v1561_v5  ;;  %2241 = vlog2.f32 %v1555_v45 }
  0x85   : > { %3541 = vst [vmem:[#allocation17_spill] sm:$0xff] %v2831_v11  ;;  %v1567_v46 = vadd.f32 %v2238_v25, %v1566_v24  ;;  %v1568_v21 = vsel %vm910_vm3, %v2240_v33, 0.0 }
  0x86   : > { %v1564_v25 = vrot.slane %v1563_v40, 1 }
  0x87   : > { %v2859_v56 = vadd.f32 %v1568_v21, %v1567_v46 }
  0x88   : > { %v2913_v4 = vadd.f32 %v1564_v25, %v1563_v40 }
  0xa7   : > { %v2786_v53 = vpop.xlane.xlu0 %411 }
  0xa8   : > { %v2837_v47 = vpop.xlane.xlu1 %417 }
  0xab   : > { %v2818_v57 = vpop.xlane.xlu0 %414 }
  0xf6   : > { %v554_v20 = vpop.f32.mrb[0].mxu0 }
  0xf7   : > { %v556_v26 = vpop.f32.mrb[1].mxu0  ;;  %v844_v39 = vmul.f32 2.0, %v554_v20 }
  0xf8   : > { %v845_v10 = vmul.f32 2.0, %v556_v26 }
  0xf9   : > { %v643_v34 = vpop.f32.mrb[0].mxu1  ;;  %v2846_v52 = vsub.f32 %v2786_v53, %v844_v39 }
  0xfa   : > { %v645_v16 = vpop.f32.mrb[1].mxu1  ;;  %v560_v42 = vpop.f32.mrb[2].mxu0  ;;  %v846_v55 = vmul.f32 2.0, %v643_v34  ;;  %v2854_v5 = vsub.f32 %v2786_v53, %v845_v10 }
  0xfb   : > { %v852_v18 = vmul.f32 2.0, %v560_v42  ;;  %v562_v17 = vpop.f32.mrb[3].mxu0  ;;  %v847_v63 = vmul.f32 2.0, %v645_v16  ;;  %v2880_v10 = vpop.xlane.xlu1 %421 }
  0xfc   : > { %v853_v58 = vmul.f32 2.0, %v562_v17  ;;  %v2864_v51 = vsub.f32 %v2786_v53, %v846_v55  ;;  %v1456_v55 = vmul.f32 1.442695, %v1417_v36 }
  0xfd   : > { %v2849_v0 = vsub.f32 %v2818_v57, %v852_v18  ;;  %v649_v2 = vpop.f32.mrb[2].mxu1  ;;  %v2872_v33 = vsub.f32 %v2786_v53, %v847_v63 }
  0xfe   : > { %v2857_v7 = vsub.f32 %v2818_v57, %v853_v58  ;;  %v854_v8 = vmul.f32 2.0, %v649_v2  ;;  %v651_v12 = vpop.f32.mrb[3].mxu1  ;;  %v566_v48 = vpop.f32.mrb[4].mxu0  ;;  %2243 = vpow2.f32 %v1456_v55 }
  0xff   : > { %v908_v14 = vmin.f32 %v2846_v52, %v2849_v0  ;;  %v855_v20 = vmul.f32 2.0, %v651_v12  ;;  %v860_v50 = vmul.f32 2.0, %v566_v48  ;;  %v568_v24 = vpop.f32.mrb[5].mxu0 }
 0x100   : > { %v919_v26 = vmin.f32 %v2854_v5, %v2857_v7  ;;  %v2869_v30 = vsub.f32 %v2818_v57, %v854_v8  ;;  %v861_v31 = vmul.f32 2.0, %v568_v24  ;;  %v2896_v24 = vmul.f32 1.442695, %v1425_v3 }
 0x101   : > { %v2875_v45 = vsub.f32 %v2818_v57, %v855_v20  ;;  %v2878_v39 = vsub.f32 %v2837_v47, %v860_v50  ;;  %v655_v34 = vpop.f32.mrb[4].mxu1 }
 0x102   : > { %v929_v42 = vmin.f32 %v2864_v51, %v2869_v30  ;;  %v2887_v46 = vsub.f32 %v2837_v47, %v861_v31  ;;  %v862_v18 = vmul.f32 2.0, %v655_v34  ;;  %v657_v17 = vpop.f32.mrb[5].mxu1  ;;  %v572_v21 = vpop.f32.mrb[6].mxu0  ;;  %2245 = vpow2.f32 %v2896_v24 }
 0x103   : > { %v939_v58 = vmin.f32 %v2872_v33, %v2875_v45  ;;  %v863_v63 = vmul.f32 2.0, %v657_v17  ;;  %v868_v2 = vmul.f32 2.0, %v572_v21  ;;  %v574_v8 = vpop.f32.mrb[7].mxu0  ;;  %v909_v12 = vmin.f32 %v908_v14, %v2878_v39  ;;  %v2907_v21 = vpop.eup %2241 }
 0x104   : > { %v2893_v48 = vsub.f32 %v2837_v47, %v862_v18  ;;  %v869_v20 = vmul.f32 2.0, %v574_v8  ;;  %v920_v50 = vmin.f32 %v919_v26, %v2887_v46  ;;  %2247 = vlog2.f32 %v2913_v4 }
 0x105   : > { %v2899_v31 = vsub.f32 %v2837_v47, %v863_v63  ;;  %v2902_v36 = vsub.f32 %v2880_v10, %v868_v2  ;;  %v661_v34 = vpop.f32.mrb[6].mxu1 }
 0x106   : > { %v930_v18 = vmin.f32 %v929_v42, %v2893_v48  ;;  %v2911_v26 = vsub.f32 %v2880_v10, %v869_v20  ;;  %v870_v3 = vmul.f32 2.0, %v661_v34  ;;  %v663_v8 = vpop.f32.mrb[7].mxu1  ;;  %v732_v63 = vpop.f32.mrb[8].mxu0 }
 0x107   : > { %v940_v2 = vmin.f32 %v939_v58, %v2899_v31  ;;  %v911_v17 = vsel %vm910_vm3, %v2902_v36, inf  ;;  %v871_v16 = vmul.f32 2.0, %v663_v8  ;;  %v848_v61 = vmul.f32 2.0, %v732_v63  ;;  %v734_v14 = vpop.f32.mrb[9].mxu0 }
 0x108   : > { %v912_v54 = vmin.f32 %v909_v12, %v911_v17  ;;  %v921_v42 = vsel %vm910_vm3, %v2911_v26, inf  ;;  %v2921_v20 = vsub.f32 %v2880_v10, %v870_v3  ;;  %v849_v34 = vmul.f32 2.0, %v734_v14 }
 0x109   : > { %v922_v23 = vmin.f32 %v920_v50, %v921_v42  ;;  %v2924_v40 = vsub.f32 %v2880_v10, %v871_v16  ;;  %v2927_v25 = vsub.f32 %v2786_v53, %v848_v61  ;;  %v821_v58 = vpop.f32.mrb[8].mxu1 }
 0x10a   : > { %v913_v8 = vrot.slane %v912_v54, 4  ;;  %v931_v12 = vsel %vm910_vm3, %v2921_v20, inf  ;;  %v850_v17 = vmul.f32 2.0, %v821_v58  ;;  %v2932_v63 = vsub.f32 %v2786_v53, %v849_v34  ;;  %v823_v3 = vpop.f32.mrb[9].mxu1  ;;  %v738_v15 = vpop.f32.mrb[10].mxu0 }
 0x10b   : > { %3544 = vst [vmem:[#allocation20_spill] sm:$0xff] %v2927_v25  ;;  %v923_v14 = vrot.slane %v922_v23, 4  ;;  %v932_v50 = vmin.f32 %v930_v18, %v931_v12  ;;  %v941_v16 = vsel %vm910_vm3, %v2924_v40, inf  ;;  %v851_v42 = vmul.f32 2.0, %v823_v3  ;;  %v740_v61 = vpop.f32.mrb[11].mxu0 }
 0x10c   : > { %3545 = vst [vmem:[#allocation21_spill] sm:$0xff] %v2932_v63  ;;  %v914_v1 = vmin.f32 %v912_v54, %v913_v8  ;;  %v942_v22 = vmin.f32 %v940_v2, %v941_v16  ;;  %v2937_v55 = vsub.f32 %v2786_v53, %v850_v17  ;;  %v856_v19 = vmul.f32 2.0, %v738_v15 }
 0x10d   : > { %v924_v60 = vmin.f32 %v922_v23, %v923_v14  ;;  %v933_v58 = vrot.slane %v932_v50, 4  ;;  %v2940_v34 = vsub.f32 %v2786_v53, %v851_v42  ;;  %v857_v43 = vmul.f32 2.0, %v740_v61  ;;  %v827_v13 = vpop.f32.mrb[10].mxu1 }
 0x10e   : > { %v915_v6 = vrot.slane %v914_v1, 2  ;;  %v943_v18 = vrot.slane %v942_v22, 4  ;;  %v2943_v12 = vsub.f32 %v2818_v57, %v856_v19  ;;  %v858_v3 = vmul.f32 2.0, %v827_v13  ;;  %v829_v27 = vpop.f32.mrb[11].mxu1  ;;  %v744_v54 = vpop.f32.mrb[12].mxu0 }
 0x10f   : > { %v925_v2 = vrot.slane %v924_v60, 2  ;;  %v934_v8 = vmin.f32 %v932_v50, %v933_v58  ;;  %v2946_v17 = vsub.f32 %v2818_v57, %v857_v43  ;;  %v859_v15 = vmul.f32 2.0, %v829_v27  ;;  %v746_v23 = vpop.f32.mrb[13].mxu0 }
 0x110   : > { %3546 = vst [vmem:[#allocation22_spill] sm:$0xff] %v2943_v12  ;;  %v916_v14 = vmin.f32 %v914_v1, %v915_v6  ;;  %v944_v53 = vmin.f32 %v942_v22, %v943_v18  ;;  %v949_v16 = vmin.f32 %v2927_v25, %v2943_v12  ;;  %v2951_v42 = vsub.f32 %v2818_v57, %v858_v3  ;;  %v2962_v3 = vpop.eup %2243 }
 0x111   : > { %3547 = vst [vmem:[#allocation23_spill] sm:$0xff] %v2946_v17  ;;  %v926_v19 = vmin.f32 %v924_v60, %v925_v2  ;;  %v935_v61 = vrot.slane %v934_v8, 2  ;;  %v959_v13 = vmin.f32 %v2932_v63, %v2946_v17  ;;  %v2956_v50 = vsub.f32 %v2818_v57, %v859_v15  ;;  %v833_v43 = vpop.f32.mrb[12].mxu1  ;;  %3548 = vst [vmem:[#allocation24_spill] sm:$0xff] %v2962_v3 }
 0x112   : > { %v917_v58 = vrot.slane %v916_v14, 1  ;;  %v945_v27 = vrot.slane %v944_v53, 2  ;;  %v864_v1 = vmul.f32 2.0, %v744_v54  ;;  %v835_v6 = vpop.f32.mrb[13].mxu1  ;;  %v2960_v18 = vpop.f32.mrb[14].mxu0  ;;  %v865_v11 = vmul.f32 2.0, %v746_v23 }
 0x113   : > { %v927_v60 = vrot.slane %v926_v19, 1  ;;  %v936_v2 = vmin.f32 %v934_v8, %v935_v61  ;;  %v979_v38 = vmin.f32 %v2940_v34, %v2956_v50  ;;  %v2966_v57 = vpop.f32.mrb[15].mxu0  ;;  %v866_v22 = vmul.f32 2.0, %v833_v43 }
 0x114   : > { %v918_v15 = vmin.f32 %v916_v14, %v917_v58  ;;  %v946_v17 = vmin.f32 %v944_v53, %v945_v27  ;;  %v2969_v63 = vsub.f32 %v2837_v47, %v864_v1  ;;  %v2972_v12 = vsub.f32 %v2837_v47, %v865_v11 }
 0x115   : > { %v928_v54 = vmin.f32 %v926_v19, %v927_v60  ;;  %v937_v37 = vrot.slane %v936_v2, 1  ;;  %v867_v3 = vmul.f32 2.0, %v835_v6  ;;  %v2974_v25 = vpop.f32.mrb[14].mxu1 }
 0x116   : > { %vm994_vm5 = vcmp.le.f32.partialorder %v2846_v52, %v918_v15  ;;  %vm1002_vm6 = vcmp.le.f32.partialorder %v2849_v0, %v918_v15  ;;  %vm1010_vm7 = vcmp.le.f32.partialorder %v2878_v39, %v918_v15  ;;  %vm1018_vm8 = vcmp.le.f32.partialorder %v2902_v36, %v918_v15  ;;  %v2980_v8 = vpop.f32.mrb[15].mxu1 }
 0x117   : > { %vm995_vm9 = vcmp.le.f32.partialorder %v2854_v5, %v928_v54  ;;  %vm1003_vm10 = vcmp.le.f32.partialorder %v2857_v7, %v928_v54  ;;  %vm1011_vm11 = vcmp.le.f32.partialorder %v2887_v46, %v928_v54  ;;  %vm1019_vm12 = vcmp.le.f32.partialorder %v2911_v26, %v928_v54 }
 0x118   : > { %v1026_v11 = vsel %vm994_vm5, %v2492_v9, 25  ;;  %v1027_v52 = vsel %vm995_vm9, %v2492_v9, 25  ;;  %v1034_v0 = vsel %vm1002_vm6, %v2805_v28, 25  ;;  %v1035_v39 = vsel %vm1003_vm10, %v2805_v28, 25 }
 0x119   : > { %v1042_v36 = vsel %vm1010_vm7, %v2808_v29, 25  ;;  %v1043_v23 = vsel %vm1011_vm11, %v2808_v29, 25  ;;  %v1050_v5 = vsel %vm1018_vm8, %v2811_v44, 25  ;;  %v1051_v7 = vsel %vm1019_vm12, %v2811_v44, 25 }
 0x11a   : > { %vm1058_vm13 = vcmp.lt.s32.totalorder %v1026_v11, %v1034_v0  ;;  %v1062_v46 = vsel %vm910_vm3, %v1050_v5, 2147483647  ;;  %vm1074_vm14 = vcmp.lt.s32.totalorder %v1027_v52, %v1035_v39  ;;  %v1078_v26 = vsel %vm910_vm3, %v1051_v7, 2147483647 }
 0x11b   : > { %v1059_v14 = vsel %vm1058_vm13, %v1026_v11, %v1034_v0  ;;  %v1075_v53 = vsel %vm1074_vm14, %v1027_v52, %v1035_v39  ;;  %v938_v19 = vmin.f32 %v936_v2, %v937_v37  ;;  %v947_v61 = vrot.slane %v946_v17, 1 }
 0x11c   : > { %vm1060_vm15 = vcmp.lt.s32.totalorder %v1059_v14, %v1042_v36  ;;  %vm1076_vm0 = vcmp.lt.s32.totalorder %v1075_v53, %v1043_v23  ;;  %v2997_v43 = vmin.f32 %v949_v16, %v2969_v63  ;;  %v3000_v58 = vmin.f32 %v959_v13, %v2972_v12 }
 0x11d   : > { %v1061_v27 = vsel %vm1060_vm15, %v1059_v14, %v1042_v36  ;;  %v1077_v1 = vsel %vm1076_vm0, %v1075_v53, %v1043_v23  ;;  %vm996_vm1 = vcmp.le.f32.partialorder %v2864_v51, %v938_v19  ;;  %vm1004_vm2 = vcmp.le.f32.partialorder %v2869_v30, %v938_v19 }
 0x11e   : > { %vm1063_vm4 = vcmp.lt.s32.totalorder %v1061_v27, %v1062_v46  ;;  %vm1079_vm5 = vcmp.lt.s32.totalorder %v1077_v1, %v1078_v26  ;;  %vm1012_vm6 = vcmp.le.f32.partialorder %v2893_v48, %v938_v19  ;;  %vm1020_vm7 = vcmp.le.f32.partialorder %v2921_v20, %v938_v19 }
 0x11f   : > { %v1064_v37 = vsel %vm1063_vm4, %v1061_v27, %v1062_v46  ;;  %v1080_v6 = vsel %vm1079_vm5, %v1077_v1, %v1078_v26  ;;  %v1028_v16 = vsel %vm996_vm1, %v2492_v9, 25  ;;  %v1036_v60 = vsel %vm1004_vm2, %v2805_v28, 25 }
 0x120   : > { %v1065_v13 = vrot.slane %v1064_v37, 4  ;;  %v1081_v2 = vrot.slane %v1080_v6, 4  ;;  %v1044_v15 = vsel %vm1012_vm6, %v2808_v29, 25  ;;  %v1052_v51 = vsel %vm1020_vm7, %v2811_v44, 25 }
 0x121   : > { %vm1090_vm8 = vcmp.lt.s32.totalorder %v1028_v16, %v1036_v60  ;;  %v1094_v30 = vsel %vm910_vm3, %v1052_v51, 2147483647  ;;  %v948_v54 = vmin.f32 %v946_v17, %v947_v61  ;;  %v3012_v48 = vsub.f32 %v2837_v47, %v866_v22  ;;  %v2264_v51 = vld [vmem:[%s2566_s8 + $0x48] sm:$0xff] }
 0x122   : > { %vm1066_vm9 = vcmp.lt.s32.totalorder %v1064_v37, %v1065_v13  ;;  %vm1082_vm10 = vcmp.lt.s32.totalorder %v1080_v6, %v1081_v2  ;;  %v1091_v20 = vsel %vm1090_vm8, %v1028_v16, %v1036_v60  ;;  %v3015_v11 = vsub.f32 %v2837_v47, %v867_v3  ;;  %v2262_v60 = vld [vmem:[%s2566_s8 + $0x8] sm:$0xff] }
 0x123   : > { %v1067_v52 = vsel %vm1066_vm9, %v1064_v37, %v1065_v13  ;;  %v1083_v0 = vsel %vm1082_vm10, %v1080_v6, %v1081_v2  ;;  %vm1092_vm11 = vcmp.lt.s32.totalorder %v1091_v20, %v1044_v15  ;;  %vm997_vm12 = vcmp.le.f32.partialorder %v2872_v33, %v948_v54  ;;  %v2261_v6 = vld [vmem:[%s2566_s8] sm:$0xff] }
 0x124   : > { %v1068_v39 = vrot.slane %v1067_v52, 2  ;;  %v1084_v36 = vrot.slane %v1083_v0, 2  ;;  %v1093_v23 = vsel %vm1092_vm11, %v1091_v20, %v1044_v15  ;;  %vm1005_vm13 = vcmp.le.f32.partialorder %v2875_v45, %v948_v54  ;;  %v2263_v2 = vld [vmem:[%s2566_s8 + $0x40] sm:$0xff] }
 0x125   : > { %vm1095_vm14 = vcmp.lt.s32.totalorder %v1093_v23, %v1094_v30  ;;  %vm1013_vm15 = vcmp.le.f32.partialorder %v2899_v31, %v948_v54  ;;  %vm1021_vm0 = vcmp.le.f32.partialorder %v2924_v40, %v948_v54  ;;  %v1029_v17 = vsel %vm997_vm12, %v2492_v9, 25  ;;  %v2265_v54 = vld [vmem:[%s2566_s8 + $0x80] sm:$0xff] }
 0x126   : > { %vm1069_vm1 = vcmp.lt.s32.totalorder %v1067_v52, %v1068_v39  ;;  %vm1085_vm2 = vcmp.lt.s32.totalorder %v1083_v0, %v1084_v36  ;;  %v1096_v47 = vsel %vm1095_vm14, %v1093_v23, %v1094_v30  ;;  %v1037_v22 = vsel %vm1005_vm13, %v2805_v28, 25  ;;  %v2268_v23 = vld [vmem:[%s2566_s8 + $0xc8] sm:$0x1] }
 0x127   : > { %v1070_v3 = vsel %vm1069_vm1, %v1067_v52, %v1068_v39  ;;  %v1086_v5 = vsel %vm1085_vm2, %v1083_v0, %v1084_v36  ;;  %v1097_v33 = vrot.slane %v1096_v47, 4  ;;  %v1045_v7 = vsel %vm1013_vm15, %v2808_v29, 25  ;;  %v2266_v52 = vld [vmem:[%s2566_s8 + $0x88] sm:$0xff]  ;;  %v2267_v39 = vld [vmem:[%s2566_s8 + $0xc0] sm:$0x1] }
 0x128   : > { %v1071_v46 = vrot.slane %v1070_v3, 1  ;;  %v1087_v26 = vrot.slane %v1086_v5, 1  ;;  %v1053_v45 = vsel %vm1021_vm0, %v2811_v44, 25  ;;  %vm1106_vm4 = vcmp.lt.s32.totalorder %v1029_v17, %v1037_v22 }
 0x129   : > { %vm1098_vm5 = vcmp.lt.s32.totalorder %v1096_v47, %v1097_v33  ;;  %v1107_v31 = vsel %vm1106_vm4, %v1029_v17, %v1037_v22  ;;  %v1110_v40 = vsel %vm910_vm3, %v1053_v45, 2147483647  ;;  %v3549_v14 = vmin.f32 %v2937_v55, %v2951_v42 }
 0x12a   : > { %vm1072_vm6 = vcmp.lt.s32.totalorder %v1070_v3, %v1071_v46  ;;  %vm1088_vm7 = vcmp.lt.s32.totalorder %v1086_v5, %v1087_v26  ;;  %v1099_v19 = vsel %vm1098_vm5, %v1096_v47, %v1097_v33  ;;  %vm1108_vm8 = vcmp.lt.s32.totalorder %v1107_v31, %v1045_v7 }
 0x12b   : > { %v3030_v53 = vmin.f32 %v3549_v14, %v3012_v48  ;;  %v1073_v61 = vsel %vm1072_vm6, %v1070_v3, %v1071_v46  ;;  %v1089_v27 = vsel %vm1088_vm7, %v1086_v5, %v1087_v26  ;;  %v1100_v1 = vrot.slane %v1099_v19, 2 }
 0x12c   : > { %v1109_v37 = vsel %vm1108_vm8, %v1107_v31, %v1045_v7  ;;  %vm1186_vm9 = vcmp.eq.s32.totalorder %v2492_v9, %v1073_v61  ;;  %vm1187_vm10 = vcmp.eq.s32.totalorder %v2492_v9, %v1089_v27  ;;  %vm1194_vm11 = vcmp.eq.s32.totalorder %v2805_v28, %v1073_v61 }
 0x12d   : > { %vm1195_vm12 = vcmp.eq.s32.totalorder %v2805_v28, %v1089_v27  ;;  %vm1202_vm13 = vcmp.eq.s32.totalorder %v2808_v29, %v1073_v61  ;;  %vm1203_vm14 = vcmp.eq.s32.totalorder %v2808_v29, %v1089_v27  ;;  %vm1210_vm15 = vcmp.eq.s32.totalorder %v2811_v44, %v1073_v61 }
 0x12e   : > { %vm1211_vm0 = vcmp.eq.s32.totalorder %v2811_v44, %v1089_v27  ;;  %v1218_v16 = vsel %vm1186_vm9, %v2261_v6, 0.0  ;;  %v1219_v13 = vsel %vm1187_vm10, %v2262_v60, 0.0  ;;  %v1226_v15 = vsel %vm1194_vm11, %v2263_v2, 0.0 }
 0x12f   : > { %v1227_v30 = vsel %vm1195_vm12, %v2264_v51, 0.0  ;;  %v1234_v20 = vsel %vm1202_vm13, %v2265_v54, 0.0  ;;  %v1235_v0 = vsel %vm1203_vm14, %v2266_v52, 0.0  ;;  %v1242_v36 = vsel %vm1210_vm15, %v2267_v39, 0.0 }
 0x130   : > { %v1243_v17 = vsel %vm1211_vm0, %v2268_v23, 0.0  ;;  %v1250_v47 = vadd.f32 %v1226_v15, %v1218_v16  ;;  %v1252_v22 = vsel %vm910_vm3, %v1242_v36, 0.0  ;;  %v1260_v3 = vadd.f32 %v1227_v30, %v1219_v13  ;;  %v2269_v15 = vld [vmem:[%s2566_s8 + $0x10] sm:$0xff] }
 0x131   : > { %v1262_v5 = vsel %vm910_vm3, %v1243_v17, 0.0  ;;  %vm1101_vm1 = vcmp.lt.s32.totalorder %v1099_v19, %v1100_v1  ;;  %vm1111_vm2 = vcmp.lt.s32.totalorder %v1109_v37, %v1110_v40  ;;  %v3056_v33 = vmin.f32 %v979_v38, %v3015_v11  ;;  %v2270_v30 = vld [vmem:[%s2566_s8 + $0x50] sm:$0xff] }
 0x132   : > { %v872_v7 = vmul.f32 2.0, %v2960_v18  ;;  %v1251_v46 = vadd.f32 %v1250_v47, %v1234_v20  ;;  %v1261_v26 = vadd.f32 %v1260_v3, %v1235_v0  ;;  %v1102_v45 = vsel %vm1101_vm1, %v1099_v19, %v1100_v1  ;;  %v2271_v20 = vld [vmem:[%s2566_s8 + $0x90] sm:$0xff] }
 0x133   : > { %v1112_v31 = vsel %vm1111_vm2, %v1109_v37, %v1110_v40  ;;  %v1103_v14 = vrot.slane %v1102_v45, 1  ;;  %v873_v6 = vmul.f32 2.0, %v2966_v57  ;;  %v874_v13 = vmul.f32 2.0, %v2974_v25  ;;  %v2272_v0 = vld [vmem:[%s2566_s8 + $0xd0] sm:$0x1] }
 0x134   : > { %v1113_v61 = vrot.slane %v1112_v31, 4  ;;  %v3060_v27 = vsub.f32 %v2880_v10, %v872_v7  ;;  %v1253_v16 = vadd.f32 %v1252_v22, %v1251_v46  ;;  %v1263_v60 = vadd.f32 %v1262_v5, %v1261_v26 }
 0x135   : > { %v3550_v38 = vsub.f32 %v2742_v59, %v2816_v49  ;;  %vm1104_vm4 = vcmp.lt.s32.totalorder %v1102_v45, %v1103_v14  ;;  %v3072_v19 = vsub.f32 %v2880_v10, %v873_v6  ;;  %v3087_v46 = vsub.f32 %v2880_v10, %v874_v13 }
 0x136   : > { %vm1114_vm5 = vcmp.lt.s32.totalorder %v1112_v31, %v1113_v61  ;;  %v951_v40 = vsel %vm910_vm3, %v3060_v27, inf  ;;  %v1254_v57 = vrot.slane %v1253_v16, 4  ;;  %v1264_v1 = vrot.slane %v1263_v60, 4 }
 0x137   : > { %v3067_v18 = vmul.f32 1.442695, %v3550_v38  ;;  %v1105_v25 = vsel %vm1104_vm4, %v1102_v45, %v1103_v14  ;;  %v1115_v37 = vsel %vm1114_vm5, %v1112_v31, %v1113_v61  ;;  %v952_v3 = vmin.f32 %v2997_v43, %v951_v40 }
 0x138   : > { %vm1188_vm6 = vcmp.eq.s32.totalorder %v2492_v9, %v1105_v25  ;;  %vm1196_vm7 = vcmp.eq.s32.totalorder %v2805_v28, %v1105_v25  ;;  %vm1204_vm8 = vcmp.eq.s32.totalorder %v2808_v29, %v1105_v25  ;;  %vm1212_vm9 = vcmp.eq.s32.totalorder %v2811_v44, %v1105_v25 }
 0x139   : > { %v1255_v59 = vadd.f32 %v1254_v57, %v1253_v16  ;;  %v1265_v2 = vadd.f32 %v1264_v1, %v1263_v60  ;;  %v1220_v51 = vsel %vm1188_vm6, %v2269_v15, 0.0  ;;  %v1228_v54 = vsel %vm1196_vm7, %v2270_v30, 0.0 }
 0x13a   : > { %v1236_v52 = vsel %vm1204_vm8, %v2271_v20, 0.0  ;;  %v1244_v39 = vsel %vm1212_vm9, %v2272_v0, 0.0  ;;  %v1270_v36 = vadd.f32 %v1228_v54, %v1220_v51  ;;  %v1116_v23 = vrot.slane %v1115_v37, 2 }
 0x13b   : > { %v1256_v17 = vrot.slane %v1255_v59, 2  ;;  %v1266_v47 = vrot.slane %v1265_v2, 2  ;;  %v1272_v22 = vsel %vm910_vm3, %v1244_v39, 0.0  ;;  %v961_v7 = vsel %vm910_vm3, %v3072_v19, inf  ;;  %v2275_v39 = vld [vmem:[%s2566_s8 + $0x98] sm:$0xff] }
 0x13c   : > { %v1271_v5 = vadd.f32 %v1270_v36, %v1236_v52  ;;  %vm1117_vm10 = vcmp.lt.s32.totalorder %v1115_v37, %v1116_v23  ;;  %v953_v14 = vrot.slane %v952_v3, 4  ;;  %v962_v16 = vmin.f32 %v3000_v58, %v961_v7  ;;  %v2274_v52 = vld [vmem:[%s2566_s8 + $0x58] sm:$0xff] }
 0x13d   : > { %v1257_v26 = vadd.f32 %v1256_v17, %v1255_v59  ;;  %v1267_v45 = vadd.f32 %v1266_v47, %v1265_v2  ;;  %v1118_v31 = vsel %vm1117_vm10, %v1115_v37, %v1116_v23  ;;  %v971_v60 = vsel %vm910_vm3, %v3087_v46, inf  ;;  %v2276_v23 = vld [vmem:[%s2566_s8 + $0xd8] sm:$0x1] }
 0x13e   : > { %v1273_v61 = vadd.f32 %v1272_v22, %v1271_v5  ;;  %v1119_v6 = vrot.slane %v1118_v31, 1  ;;  %v954_v40 = vmin.f32 %v952_v3, %v953_v14  ;;  %v972_v57 = vmin.f32 %v3030_v53, %v971_v60 }
 0x13f   : > { %v1258_v43 = vrot.slane %v1257_v26, 1  ;;  %v1268_v38 = vrot.slane %v1267_v45, 1  ;;  %v963_v13 = vrot.slane %v962_v16, 4  ;;  %v3551_v25 = vrot.slane %v2859_v56, 4 }
 0x140   : > { %v1274_v1 = vrot.slane %v1273_v61, 4  ;;  %vm1120_vm11 = vcmp.lt.s32.totalorder %v1118_v31, %v1119_v6  ;;  %v955_v15 = vrot.slane %v954_v40, 2  ;;  %v875_v24 = vmul.f32 2.0, %v2980_v8 }
 0x141   : > { %v3096_v37 = vadd.f32 %v3551_v25, %v2859_v56  ;;  %v1259_v59 = vadd.f32 %v1258_v43, %v1257_v26  ;;  %v1269_v58 = vadd.f32 %v1268_v38, %v1267_v45  ;;  %v1121_v2 = vsel %vm1120_vm11, %v1118_v31, %v1119_v6  ;;  %v2273_v56 = vld [vmem:[%s2566_s8 + $0x18] sm:$0xff] }
 0x142   : > { %v1275_v51 = vadd.f32 %v1274_v1, %v1273_v61  ;;  %vm1189_vm12 = vcmp.eq.s32.totalorder %v2492_v9, %v1121_v2  ;;  %vm1197_vm13 = vcmp.eq.s32.totalorder %v2805_v28, %v1121_v2  ;;  %vm1205_vm14 = vcmp.eq.s32.totalorder %v2808_v29, %v1121_v2 }
 0x143   : > { %v3102_v53 = vsub.f32 %v2814_v32, %v1259_v59  ;;  %v3105_v30 = vsub.f32 %v2821_v41, %v1269_v58  ;;  %vm1213_vm15 = vcmp.eq.s32.totalorder %v2811_v44, %v1121_v2  ;;  %v1221_v54 = vsel %vm1189_vm12, %v2273_v56, 0.0  ;;  %v3556_v56 = vld [vmem:[#allocation16_spill] sm:$0xff] }
 0x144   : > { %v1276_v20 = vrot.slane %v1275_v51, 2  ;;  %v1229_v0 = vsel %vm1197_vm13, %v2274_v52, 0.0  ;;  %v1237_v36 = vsel %vm1205_vm14, %v2275_v39, 0.0  ;;  %v1245_v17 = vsel %vm1213_vm15, %v2276_v23, 0.0  ;;  %v3150_v52 = vpop.eup %2245 }
 0x145   : > { %v1280_v47 = vadd.f32 %v1229_v0, %v1221_v54  ;;  %vm1687_vm0 = vcmp.ne.f32.partialorder %v3102_v53, 0.0  ;;  %vm1688_vm1 = vcmp.ne.f32.partialorder %v3105_v30, 0.0  ;;  %v3552_v41 = vmov 0.0  }
 0x146   : > { %v1277_v32 = vadd.f32 %v1276_v20, %v1275_v51  ;;  %v3116_v22 = vsel %vm1687_vm0, 1.0, %v3552_v41  ;;  %v3119_v3 = vsel %vm1688_vm1, 1.0, %v3552_v41  ;;  %v956_v5 = vmin.f32 %v954_v40, %v955_v15  ;;  %v3555_v51 = vld [vmem:[#allocation22_spill] sm:$0xff] }
 0x147   : > { %v1281_v7 = vadd.f32 %v1280_v47, %v1237_v36  ;;  %v1711_v26 = vcombine.low %v3116_v22, %v3119_v3  ;;  %v964_v45 = vmin.f32 %v962_v16, %v963_v13  ;;  %v973_v31 = vrot.slane %v972_v57, 4 }
 0x148   : > { %v1278_v14 = vrot.slane %v1277_v32, 1  ;;  %v1282_v61 = vsel %vm910_vm3, %v1245_v17, 0.0  ;;  %v957_v6 = vrot.slane %v956_v5, 1  ;;  %v3553_v1 = vsub.f32 %v2745_v62, %v2816_v49 }
 0x149   : > { %v1283_v60 = vadd.f32 %v1282_v61, %v1281_v7  ;;  %v965_v43 = vrot.slane %v964_v45, 2  ;;  %v974_v38 = vmin.f32 %v972_v57, %v973_v31  ;;  %v3129_v58 = vmul.f32 0.6931472, %v2907_v21  ;;  %v3554_v57 = vld [vmem:[#allocation20_spill] sm:$0xff] }
 0x14a   : > { %v1504_v25 = vmul.f32 1.442695, %v3553_v1  ;;  %v1279_v40 = vadd.f32 %v1278_v14, %v1277_v32  ;;  %v958_v59 = vmin.f32 %v956_v5, %v957_v6  ;;  %v3133_v15 = vsub.f32 %v2880_v10, %v875_v24  ;;  %v3162_v14 = vpop.eup %2247  ;;  %v3557_v6 = vld [vmem:[#allocation21_spill] sm:$0xff]  ;;  %v3558_v24 = vld [vmem:[#allocation23_spill] sm:$0xff] }
 0x14b   : > { %v1284_v16 = vrot.slane %v1283_v60, 4  ;;  %v966_v13 = vmin.f32 %v964_v45, %v965_v43  ;;  %v975_v2 = vrot.slane %v974_v38, 2  ;;  %v1572_v20 = vrot.slane %v3096_v37, 2 }
 0x14c   : > { %v1612_v8 = vsub.f32 %v2824_v35, %v1279_v40  ;;  %vm998_vm2 = vcmp.le.f32.partialorder %v3554_v57, %v958_v59  ;;  %vm1006_vm4 = vcmp.le.f32.partialorder %v3555_v51, %v958_v59  ;;  %vm1014_vm5 = vcmp.le.f32.partialorder %v2969_v63, %v958_v59 }
 0x14d   : > { %v1285_v62 = vadd.f32 %v1284_v16, %v1283_v60  ;;  %vm1022_vm6 = vcmp.le.f32.partialorder %v3060_v27, %v958_v59  ;;  %v1030_v21 = vsel %vm998_vm2, %v2492_v9, 25  ;;  %v1038_v4 = vsel %vm1006_vm4, %v2805_v28, 25  ;;  %v3559_v59 = vld [vmem:[#allocation17_spill] sm:$0xff] }
 0x14e   : > { %v3143_v54 = vmul.f32 %v3556_v56, %v1612_v8  ;;  %v1054_v10 = vsel %vm1022_vm6, %v2811_v44, 25  ;;  %v3147_v35 = vsub.s32 4, %v2492_v9  ;;  %vm1689_vm7 = vcmp.ne.f32.partialorder %v1612_v8, 0.0  ;;  %v3560_v8 = vld [vmem:[#allocation18_spill] sm:$0xff] }
 0x14f   : > { %v1286_v63 = vrot.slane %v1285_v62, 2  ;;  %vm1122_vm8 = vcmp.lt.s32.totalorder %v1030_v21, %v1038_v4  ;;  %2249 = vpow2.f32 %v3067_v18  ;;  %v1046_v27 = vsel %vm1014_vm5, %v2808_v29, 25 }
 0x150   : > { %v1123_v0 = vsel %vm1122_vm8, %v1030_v21, %v1038_v4  ;;  %v967_v39 = vrot.slane %v966_v13, 1  ;;  %v976_v36 = vmin.f32 %v974_v38, %v975_v2  ;;  %v1126_v17 = vsel %vm910_vm3, %v1054_v10, 2147483647 }
 0x151   : > { %v1287_v23 = vadd.f32 %v1286_v63, %v1285_v62  ;;  %vm1124_vm9 = vcmp.lt.s32.totalorder %v1123_v0, %v1046_v27  ;;  %v981_v47 = vsel %vm910_vm3, %v3133_v15, inf  ;;  %v1697_v18 = vsel %vm1689_vm7, 1.0, %v3552_v41 }
 0x152   : > { %v1125_v32 = vsel %vm1124_vm9, %v1123_v0, %v1046_v27  ;;  %v968_v5 = vmin.f32 %v966_v13, %v967_v39  ;;  %v977_v7 = vrot.slane %v976_v36, 1  ;;  %v3158_v45 = vmin.f32 %v3056_v33, %v981_v47 }
 0x153   : > { %v1288_v31 = vrot.slane %v1287_v23, 1  ;;  %vm1127_vm10 = vcmp.lt.s32.totalorder %v1125_v32, %v1126_v17  ;;  %2251 = vpow2.f32 %v1504_v25  ;;  %v1573_v10 = vadd.f32 %v1572_v20, %v3096_v37 }
 0x154   : > { %v1128_v61 = vsel %vm1127_vm10, %v1125_v32, %v1126_v17  ;;  %vm999_vm11 = vcmp.le.f32.partialorder %v3557_v6, %v968_v5  ;;  %vm1007_vm12 = vcmp.le.f32.partialorder %v3558_v24, %v968_v5  ;;  %vm1015_vm13 = vcmp.le.f32.partialorder %v2972_v12, %v968_v5  ;;  %v2279_v6 = vld [vmem:[%s2566_s8 + $0xa0] sm:$0xff] }
 0x155   : > { %v1289_v60 = vadd.f32 %v1288_v31, %v1287_v23  ;;  %v1129_v43 = vrot.slane %v1128_v61, 4  ;;  %vm1023_vm14 = vcmp.le.f32.partialorder %v3072_v19, %v968_v5  ;;  %v1031_v33 = vsel %vm999_vm11, %v2492_v9, 25  ;;  %v3561_v23 = vld [vmem:[#allocation19_spill] sm:$0xff]  ;;  %v2278_v31 = vld [vmem:[%s2566_s8 + $0x60] sm:$0xff] }
 0x156   : > { %v1039_v38 = vsel %vm1007_vm12, %v2805_v28, 25  ;;  %v1047_v1 = vsel %vm1015_vm13, %v2808_v29, 25  ;;  %v1055_v25 = vsel %vm1023_vm14, %v2811_v44, 25  ;;  %v978_v40 = vmin.f32 %v976_v36, %v977_v7  ;;  %v2277_v7 = vld [vmem:[%s2566_s8 + $0x20] sm:$0xff] }
 0x157   : > { %v1613_v16 = vsub.f32 %v3559_v59, %v1289_v60  ;;  %vm1130_vm15 = vcmp.lt.s32.totalorder %v1128_v61, %v1129_v43  ;;  %vm1138_vm0 = vcmp.lt.s32.totalorder %v1031_v33, %v1039_v38  ;;  %v1142_v13 = vsel %vm910_vm3, %v1055_v25, 2147483647  ;;  %v2280_v60 = vld [vmem:[%s2566_s8 + $0xe0] sm:$0x1] }
 0x158   : > { %v1131_v12 = vsel %vm1130_vm15, %v1128_v61, %v1129_v43  ;;  %v1139_v2 = vsel %vm1138_vm0, %v1031_v33, %v1039_v38  ;;  %vm1000_vm1 = vcmp.le.f32.partialorder %v2937_v55, %v978_v40  ;;  %vm1008_vm2 = vcmp.le.f32.partialorder %v2951_v42, %v978_v40  ;;  %v3562_v42 = vld [vmem:[#allocation24_spill] sm:$0xff] }
 0x159   : > { %v2250_v19 = vpop.eup %2249  ;;  %v3177_v57 = vmul.f32 %v3560_v8, %v1613_v16  ;;  %vm1690_vm4 = vcmp.ne.f32.partialorder %v1613_v16, 0.0  ;;  %v1132_v51 = vrot.slane %v1131_v12, 2  ;;  %vm1140_vm5 = vcmp.lt.s32.totalorder %v1139_v2, %v1047_v1 }
 0x15a   : > { %v1698_v62 = vsel %vm1690_vm4, 1.0, %v3552_v41  ;;  %v1141_v21 = vsel %vm1140_vm5, %v1139_v2, %v1047_v1  ;;  %vm1016_vm6 = vcmp.le.f32.partialorder %v3012_v48, %v978_v40  ;;  %vm1024_vm7 = vcmp.le.f32.partialorder %v3087_v46, %v978_v40 }
 0x15b   : > { %v1712_v4 = vcombine.low %v1697_v18, %v1698_v62  ;;  %vm1133_vm8 = vcmp.lt.s32.totalorder %v1131_v12, %v1132_v51  ;;  %vm1143_vm9 = vcmp.lt.s32.totalorder %v1141_v21, %v1142_v13  ;;  %v1032_v0 = vsel %vm1000_vm1, %v2492_v9, 25 }
 0x15c   : > { %v1134_v63 = vsel %vm1133_vm8, %v1131_v12, %v1132_v51  ;;  %v1144_v27 = vsel %vm1143_vm9, %v1141_v21, %v1142_v13  ;;  %v1040_v39 = vsel %vm1008_vm2, %v2805_v28, 25  ;;  %v3193_v48 = vrot.slane %v1711_v26, %v3561_v23  ;;  %v3563_v21 = vld [vmem:[#allocation11_spill] sm:$0xff] }
 0x15d   : > { %v2252_v36 = vpop.eup %2251  ;;  %v3196_v46 = vrot.slane %v1712_v4, %v3561_v23  ;;  %v1135_v37 = vrot.slane %v1134_v63, 1  ;;  %v1145_v20 = vrot.slane %v1144_v27, 4  ;;  %v1048_v17 = vsel %vm1016_vm6, %v2808_v29, 25 }
 0x15e   : > { %v1056_v55 = vsel %vm1024_vm7, %v2811_v44, 25  ;;  %vm1154_vm10 = vcmp.lt.s32.totalorder %v1032_v0, %v1040_v39  ;;  %v1576_v47 = vadd.f32 %v3150_v52, %v3562_v42  ;;  %v983_v5 = vrot.slane %v3158_v45, 4 }
 0x15f   : > { %v1743_v22 = vcombine.low %v3193_v48, %v3196_v46  ;;  %vm1136_vm11 = vcmp.lt.s32.totalorder %v1134_v63, %v1135_v37  ;;  %vm1146_vm12 = vcmp.lt.s32.totalorder %v1144_v27, %v1145_v20  ;;  %v1155_v3 = vsel %vm1154_vm10, %v1032_v0, %v1040_v39  ;;  %v3564_v39 = vld [vmem:[#allocation12_spill] sm:$0xff] }
 0x160   : > { %v1137_v26 = vsel %vm1136_vm11, %v1134_v63, %v1135_v37  ;;  %v1147_v32 = vsel %vm1146_vm12, %v1144_v27, %v1145_v20  ;;  %vm1156_vm13 = vcmp.lt.s32.totalorder %v1155_v3, %v1048_v17  ;;  %v1158_v52 = vsel %vm910_vm3, %v1056_v55, 2147483647  ;;  %v3566_v20 = vld [vmem:[#allocation9_spill] sm:$0xff] }
 0x161   : > { %vm1190_vm14 = vcmp.eq.s32.totalorder %v2492_v9, %v1137_v26  ;;  %vm1198_vm15 = vcmp.eq.s32.totalorder %v2805_v28, %v1137_v26  ;;  %vm1206_vm0 = vcmp.eq.s32.totalorder %v2808_v29, %v1137_v26  ;;  %vm1214_vm1 = vcmp.eq.s32.totalorder %v2811_v44, %v1137_v26 }
 0x162   : > { %v1222_v18 = vsel %vm1190_vm14, %v2277_v7, 0.0  ;;  %v1230_v61 = vsel %vm1198_vm15, %v2278_v31, 0.0  ;;  %v1238_v24 = vsel %vm1206_vm0, %v2279_v6, 0.0  ;;  %v1246_v43 = vsel %vm1214_vm1, %v2280_v60, 0.0 }
 0x163   : > { %v1290_v33 = vadd.f32 %v1230_v61, %v1222_v18  ;;  %v1148_v38 = vrot.slane %v1147_v32, 2  ;;  %v1157_v1 = vsel %vm1156_vm13, %v1155_v3, %v1048_v17  ;;  %v1574_v25 = vrot.slane %v1573_v10, 1  ;;  %v2283_v18 = vld [vmem:[%s2566_s8 + $0xa8] sm:$0xff] }
 0x164   : > { %vm1159_vm2 = vcmp.lt.s32.totalorder %v1157_v1, %v1158_v52  ;;  %v984_v40 = vmin.f32 %v3158_v45, %v983_v5  ;;  %v1577_v59 = vadd.f32 %v2250_v19, %v1576_v47  ;;  %v1292_v13 = vsel %vm910_vm3, %v1246_v43, 0.0  ;;  %v3565_v19 = vld [vmem:[#allocation5_spill] sm:$0xff]  ;;  %v2284_v61 = vld [vmem:[%s2566_s8 + $0xe8] sm:$0x1] }
 0x165   : > { %v1291_v16 = vadd.f32 %v1290_v33, %v1238_v24  ;;  %vm1149_vm4 = vcmp.lt.s32.totalorder %v1147_v32, %v1148_v38  ;;  %v1160_v12 = vsel %vm1159_vm2, %v1157_v1, %v1158_v52  ;;  %v3219_v4 = vmul.f32 %v3563_v21, %v3102_v53  ;;  %v2282_v52 = vld [vmem:[%s2566_s8 + $0x68] sm:$0xff] }
 0x166   : > { %v1150_v2 = vsel %vm1149_vm4, %v1147_v32, %v1148_v38  ;;  %v1161_v51 = vrot.slane %v1160_v12, 4  ;;  %v985_v62 = vrot.slane %v984_v40, 2  ;;  %v1578_v0 = vsel %vm910_vm3, %v2252_v36, 0.0 }
 0x167   : > { %v1293_v63 = vadd.f32 %v1292_v13, %v1291_v16  ;;  %v1151_v27 = vrot.slane %v1150_v2, 1  ;;  %v3224_v45 = vmul.f32 %v3564_v39, %v3105_v30  ;;  %v1606_v37 = vadd.f32 %v3129_v58, %v3565_v19  ;;  %v2281_v58 = vld [vmem:[%s2566_s8 + $0x28] sm:$0xff] }
 0x168   : > { %v3230_v17 = vrot.slane %v3566_v20, %v3147_v35  ;;  %vm1162_vm5 = vcmp.lt.s32.totalorder %v1160_v12, %v1161_v51  ;;  %v986_v55 = vmin.f32 %v984_v40, %v985_v62  ;;  %v1575_v36 = vadd.f32 %v1574_v25, %v1573_v10 }
 0x169   : > { %v1294_v53 = vrot.slane %v1293_v63, 4  ;;  %vm1152_vm6 = vcmp.lt.s32.totalorder %v1150_v2, %v1151_v27  ;;  %v1163_v42 = vsel %vm1162_vm5, %v1160_v12, %v1161_v51  ;;  %v1579_v26 = vadd.f32 %v1578_v0, %v1577_v59 }
 0x16a   : > { %v1153_v47 = vsel %vm1152_vm6, %v1150_v2, %v1151_v27  ;;  %v1164_v30 = vrot.slane %v1163_v42, 2  ;;  %v987_v3 = vrot.slane %v986_v55, 1  ;;  %2253 = vlog2.f32 %v1575_v36  ;;  %v2286_v27 = vld [vmem:[%s2566_s8 + $0x70] sm:$0xff] }
 0x16b   : > { %v1295_v32 = vadd.f32 %v1294_v53, %v1293_v63  ;;  %vm1191_vm7 = vcmp.eq.s32.totalorder %v2492_v9, %v1153_v47  ;;  %vm1199_vm8 = vcmp.eq.s32.totalorder %v2805_v28, %v1153_v47  ;;  %vm1207_vm9 = vcmp.eq.s32.totalorder %v2808_v29, %v1153_v47  ;;  %v2287_v53 = vld [vmem:[%s2566_s8 + $0xb0] sm:$0xff] }
 0x16c   : > { %vm1215_vm10 = vcmp.eq.s32.totalorder %v2811_v44, %v1153_v47  ;;  %v1223_v5 = vsel %vm1191_vm7, %v2281_v58, 0.0  ;;  %v1231_v7 = vsel %vm1199_vm8, %v2282_v52, 0.0  ;;  %v1239_v10 = vsel %vm1207_vm9, %v2283_v18, 0.0  ;;  %v2288_v36 = vld [vmem:[%s2566_s8 + $0xf0] sm:$0x1] }
 0x16d   : > { %v1296_v31 = vrot.slane %v1295_v32, 2  ;;  %v1247_v6 = vsel %vm1215_vm10, %v2284_v61, 0.0  ;;  %v1300_v24 = vadd.f32 %v1231_v7, %v1223_v5  ;;  %vm1165_vm11 = vcmp.lt.s32.totalorder %v1163_v42, %v1164_v30 }
 0x16e   : > { %v1166_v60 = vsel %vm1165_vm11, %v1163_v42, %v1164_v30  ;;  %v988_v43 = vmin.f32 %v986_v55, %v987_v3  ;;  %v1580_v33 = vrot.slane %v1579_v26, 4  ;;  %v1302_v25 = vsel %vm910_vm3, %v1247_v6, 0.0  ;;  %v3567_v6 = vld [vmem:[#allocation14_spill] sm:$0xff] }
 0x16f   : > { %v1297_v38 = vadd.f32 %v1296_v31, %v1295_v32  ;;  %v1301_v1 = vadd.f32 %v1300_v24, %v1239_v10  ;;  %v1167_v40 = vrot.slane %v1166_v60, 1  ;;  %v1597_v13 = vmul.f32 0.6931472, %v3162_v14  ;;  %v2285_v14 = vld [vmem:[%s2566_s8 + $0x30] sm:$0xff] }
 0x170   : > { %vm1001_vm12 = vcmp.le.f32.partialorder %v2940_v34, %v988_v43  ;;  %vm1009_vm13 = vcmp.le.f32.partialorder %v2956_v50, %v988_v43  ;;  %vm1017_vm14 = vcmp.le.f32.partialorder %v3015_v11, %v988_v43  ;;  %vm1025_vm15 = vcmp.le.f32.partialorder %v3133_v15, %v988_v43  ;;  %v3568_v11 = vld [vmem:[#allocation6_spill] sm:$0xff] }
 0x171   : > { %v1298_v59 = vrot.slane %v1297_v38, 1  ;;  %v1303_v16 = vadd.f32 %v1302_v25, %v1301_v1  ;;  %vm1168_vm0 = vcmp.lt.s32.totalorder %v1166_v60, %v1167_v40  ;;  %v1033_v2 = vsel %vm1001_vm12, %v2492_v9, 25 }
 0x172   : > { %v1169_v12 = vsel %vm1168_vm0, %v1166_v60, %v1167_v40  ;;  %v1041_v51 = vsel %vm1009_vm13, %v2805_v28, 25  ;;  %v1581_v34 = vadd.f32 %v1580_v33, %v1579_v26  ;;  %v1057_v3 = vsel %vm1025_vm15, %v2811_v44, 25 }
 0x173   : > { %v1299_v50 = vadd.f32 %v1298_v59, %v1297_v38  ;;  %v1304_v62 = vrot.slane %v1303_v16, 4  ;;  %vm1192_vm1 = vcmp.eq.s32.totalorder %v2492_v9, %v1169_v12  ;;  %vm1200_vm2 = vcmp.eq.s32.totalorder %v2805_v28, %v1169_v12 }
 0x174   : > { %vm1208_vm4 = vcmp.eq.s32.totalorder %v2808_v29, %v1169_v12  ;;  %vm1216_vm5 = vcmp.eq.s32.totalorder %v2811_v44, %v1169_v12  ;;  %v1224_v63 = vsel %vm1192_vm1, %v2285_v14, 0.0  ;;  %v1232_v0 = vsel %vm1200_vm2, %v2286_v27, 0.0  ;;  %v2254_v52 = vpop.eup %2253 }
 0x175   : > { %v1614_v19 = vsub.f32 %v1606_v37, %v1299_v50  ;;  %v1305_v55 = vadd.f32 %v1304_v62, %v1303_v16  ;;  %v1240_v42 = vsel %vm1208_vm4, %v2287_v53, 0.0  ;;  %v1248_v47 = vsel %vm1216_vm5, %v2288_v36, 0.0 }
 0x176   : > { %v1310_v30 = vadd.f32 %v1232_v0, %v1224_v63  ;;  %vm1170_vm6 = vcmp.lt.s32.totalorder %v1033_v2, %v1041_v51  ;;  %v1582_v26 = vrot.slane %v1581_v34, 2  ;;  %v1049_v37 = vsel %vm1017_vm14, %v2808_v29, 25 }
 0x177   : > { %v3260_v32 = vmul.f32 %v3230_v17, %v1614_v19  ;;  %v1306_v58 = vrot.slane %v1305_v55, 2  ;;  %v1171_v5 = vsel %vm1170_vm6, %v1033_v2, %v1041_v51  ;;  %v3266_v7 = vsub.s32 5, %v2492_v9 }
 0x178   : > { %v1311_v18 = vadd.f32 %v1310_v30, %v1240_v42  ;;  %vm1172_vm7 = vcmp.lt.s32.totalorder %v1171_v5, %v1049_v37  ;;  %v1312_v15 = vsel %vm910_vm3, %v1248_v47, 0.0  ;;  %v1174_v61 = vsel %vm910_vm3, %v1057_v3, 2147483647  ;;  %v3569_v47 = vld [vmem:[#allocation7_spill] sm:$0xff] }
 0x179   : > { %v1307_v10 = vadd.f32 %v1306_v58, %v1305_v55  ;;  %v1173_v31 = vsel %vm1172_vm7, %v1171_v5, %v1049_v37  ;;  %2255 = vpow2.f32 %v3567_v6  ;;  %v1607_v43 = vadd.f32 %v1597_v13, %v3568_v11 }
 0x17a   : > { %v1313_v24 = vadd.f32 %v1312_v15, %v1311_v18  ;;  %vm1175_vm8 = vcmp.lt.s32.totalorder %v1173_v31, %v1174_v61  ;;  %v1583_v38 = vadd.f32 %v1582_v26, %v1581_v34  ;;  %vm1691_vm9 = vcmp.ne.f32.partialorder %v1614_v19, 0.0  ;;  %v2289_v18 = vld [vmem:[%s2566_s8 + $0x38] sm:$0xff] }
 0x17b   : > { %v1308_v60 = vrot.slane %v1307_v10, 1  ;;  %v1176_v33 = vsel %vm1175_vm8, %v1173_v31, %v1174_v61  ;;  %v3274_v59 = vrot.slane %v3566_v20, %v3266_v7  ;;  %v3277_v50 = vsel %vm1691_vm9, 1.0, %v3552_v41  ;;  %v2290_v15 = vld [vmem:[%s2566_s8 + $0x78] sm:$0xff] }
 0x17c   : > { %v1314_v1 = vrot.slane %v1313_v24, 4  ;;  %v1177_v25 = vrot.slane %v1176_v33, 4  ;;  %v1584_v51 = vrot.slane %v1583_v38, 1  ;;  %v1599_v13 = vmul.f32 0.6931472, %v2254_v52  ;;  %v2291_v61 = vld [vmem:[%s2566_s8 + $0xb8] sm:$0xff] }
 0x17d   : > { %v1309_v40 = vadd.f32 %v1308_v60, %v1307_v10  ;;  %v3286_v0 = vsub.s32 6, %v2492_v9  ;;  %v2292_v60 = vld [vmem:[%s2566_s8 + $0xf8] sm:$0x1]  ;;  %vm1765_vm5 = vcmp.eq.s32.totalorder %v2492_v9, 3  ;;  %vm1762_vm6 = vcmp.eq.s32.totalorder %v2492_v9, 0  ;;  %s1937_s8 = scalar_lea.sflag [#allocation3], %s312_s16 }
 0x17e   : > { %v1315_v16 = vadd.f32 %v1314_v1, %v1313_v24  ;;  %vm1178_vm10 = vcmp.lt.s32.totalorder %v1176_v33, %v1177_v25  ;;  %v1585_v53 = vadd.f32 %v1584_v51, %v1583_v38  ;;  %v1608_v30 = vadd.f32 %v1599_v13, %v3569_v47 }
 0x17f   : > { %v1615_v12 = vsub.f32 %v1607_v43, %v1309_v40  ;;  %v1179_v2 = vsel %vm1178_vm10, %v1176_v33, %v1177_v25  ;;  %v3293_v58 = vrot.slane %v3566_v20, %v3286_v0  ;;  %v3308_v13 = vsub.s32 7, %v2492_v9 }
 0x180   : > { %v1316_v62 = vrot.slane %v1315_v16, 2  ;;  %v1180_v14 = vrot.slane %v1179_v2, 2  ;;  %2257 = vlog2.f32 %v1585_v53  ;;  %vm1763_vm7 = vcmp.eq.s32.totalorder %v2492_v9, 1 }
 0x181   : > { %v3280_v34 = vmul.f32 %v3274_v59, %v1615_v12  ;;  %vm1692_vm11 = vcmp.ne.f32.partialorder %v1615_v12, 0.0  ;;  %vm1764_vm8 = vcmp.eq.s32.totalorder %v2492_v9, 2 }
 0x182   : > { %v3283_v63 = vsel %vm1692_vm11, 1.0, %v3552_v41  ;;  %v1317_v27 = vadd.f32 %v1316_v62, %v1315_v16  ;;  %vm1181_vm12 = vcmp.lt.s32.totalorder %v1179_v2, %v1180_v14 }
 0x183   : > { %v1713_v19 = vcombine.low %v3277_v50, %v3283_v63  ;;  %v1182_v55 = vsel %vm1181_vm12, %v1179_v2, %v1180_v14  ;;  %v2256_v42 = vpop.eup %2255  ;;  %v2293_v14 = vld [vmem:[%s2772_s15] sm:$0xff]  ;;  %v1751_v63 = vrot.slane %v1743_v22, %v3561_v23 }
 0x184   : > { %v1318_v36 = vrot.slane %v1317_v27, 1  ;;  %v1183_v3 = vrot.slane %v1182_v55, 1  ;;  %v1628_v37 = vadd.f32 1.0, %v2256_v42  ;;  %v1634_v51 = vand.u32 2147483647, %v2256_v42 }
 0x186   : > { %v1319_v26 = vadd.f32 %v1318_v36, %v1317_v27  ;;  %vm1184_vm13 = vcmp.lt.s32.totalorder %v1182_v55, %v1183_v3  ;;  %2259 = vlog2.f32 %v1628_v37  ;;  %v1621_v27 = vmax.f32 %v2293_v14, 0.0 }
 0x187   : > { %v1185_v5 = vsel %vm1184_vm13, %v1182_v55, %v1183_v3  ;;  %v2294_v55 = vld [vmem:[%s2767_s12] sm:$0xff]  ;;  %v3315_v37 = vrot.slane %v3566_v20, %v3308_v13  ;;  %s2301_s12 = scalar_lea.vmem %s2300_s11, 2048 }
 0x188   : > { %v1616_v52 = vsub.f32 %v1608_v30, %v1319_v26  ;;  %vm1193_vm14 = vcmp.eq.s32.totalorder %v2492_v9, %v1185_v5  ;;  %vm1201_vm15 = vcmp.eq.s32.totalorder %v2805_v28, %v1185_v5  ;;  %vm1209_vm0 = vcmp.eq.s32.totalorder %v2808_v29, %v1185_v5  ;;  %p2303_p2 = scmp.lt.s32.totalorder %s2301_s12, %s2295_s9 }
 0x189   : > { %vm1217_vm1 = vcmp.eq.s32.totalorder %v2811_v44, %v1185_v5  ;;  %v1225_v10 = vsel %vm1193_vm14, %v2289_v18, 0.0  ;;  %v1233_v31 = vsel %vm1201_vm15, %v2290_v15, 0.0  ;;  %v1241_v6 = vsel %vm1209_vm0, %v2291_v61, 0.0 }
 0x18a   : > { %v3303_v24 = vmul.f32 %v3293_v58, %v1616_v52  ;;  %v1249_v11 = vsel %vm1217_vm1, %v2292_v60, 0.0  ;;  %v1320_v43 = vadd.f32 %v1233_v31, %v1225_v10  ;;  %v1631_v44 = vmul.f32 -0.5, %v2256_v42  ;;  %v2258_v1 = vpop.eup %2257  ;;  %v3570_v60 = vld [vmem:[#allocation13_spill] sm:$0xff]  ;;  %p2304_p3 = por %p2303_p2, %p2302_p1 }
 0x18b   : > { %v1322_v28 = vsel %vm910_vm3, %v1249_v11, 0.0  ;;  %v1601_v12 = vmul.f32 0.6931472, %v2258_v1  ;;  %v1622_v53 = vmul.f32 %v2294_v55, %v2293_v14  ;;  %vm1635_vm3 = vcmp.lt.f32.partialorder %v1634_v51, 0.0004427343 }
 0x18c   : > { %v1321_v33 = vadd.f32 %v1320_v43, %v1241_v6  ;;  %v1632_v40 = vadd.f32 1.0, %v1631_v44  ;;  %vm1693_vm2 = vcmp.ne.f32.partialorder %v1616_v52, 0.0  ;;  %v1735_v52 = vrot.slane %v1713_v19, %v3561_v23  ;;  %v3571_v43 = vld [vmem:[#allocation15_spill] sm:$0xff]  ;;  %p2305_p5 = pnand %p2304_p3, %p2298_p0 }
 0x18d   : > { %v1609_v3 = vadd.f32 %v1601_v12, %v2816_v49  ;;  %v1623_v5 = vsub.f32 %v1621_v27, %v1622_v53  ;;  %v1701_v15 = vsel %vm1693_vm2, 1.0, %v3552_v41 }
 0x18e   : > { %v1323_v29 = vadd.f32 %v1322_v28, %v1321_v33  ;;  %v1633_v47 = vmul.f32 %v2256_v42, %v1632_v40 }
 0x190   : > { %v1324_v38 = vrot.slane %v1323_v29, 4  ;;  %v2260_v2 = vpop.eup %2259 }
 0x191   : > { %v1630_v36 = vmul.f32 0.6931472, %v2260_v2 }
 0x192   : > { %v1325_v25 = vadd.f32 %v1324_v38, %v1323_v29  ;;  %v3572_v29 = vld [vmem:[#allocation8_spill] sm:$0xff]  ;;  %v3573_v38 = vld [vmem:[#allocation10_spill] sm:$0xff] }
 0x193   : > { %v1636_v18 = vsel %vm1635_vm3, %v1633_v47, %v1630_v36  ;;  %v1883_v50 = vrot.slane %v3143_v54, %v3572_v29  ;;  %v1887_v12 = vrot.slane %v3177_v57, %v3572_v29  ;;  %v1891_v54 = vrot.slane %v3260_v32, %v3572_v29 }
 0x194   : > { %v1326_v16 = vrot.slane %v1325_v25, 2  ;;  %v1637_v42 = vadd.f32 %v1636_v18, %v1623_v5  ;;  %v1875_v27 = vrot.slane %v3219_v4, %v3572_v29  ;;  %v1895_v55 = vrot.slane %v3280_v34, %v3572_v29 }
 0x195   : > { %v1899_v53 = vrot.slane %v3303_v24, %v3572_v29 }
 0x196   : > { %v1327_v62 = vadd.f32 %v1326_v16, %v1325_v25  ;;  %v1778_v11 = vrot.slane %v1637_v42, %v3570_v60  ;;  %v1782_v33 = vrot.slane %v1637_v42, %v3571_v43  ;;  %v1770_v44 = vrot.slane %v1637_v42, %v3572_v29 }
 0x197   : > { %v1774_v1 = vrot.slane %v1637_v42, %v3573_v38  ;;  %v1786_v25 = vrot.slane %v1637_v42, %v3147_v35  ;;  %v1794_v40 = vrot.slane %v1637_v42, %v3286_v0  ;;  %v1798_v16 = vrot.slane %v1637_v42, %v3308_v13 }
 0x198   : > { %v1328_v30 = vrot.slane %v1327_v62, 1  ;;  %v1807_v48 = vsel %vm1765_vm5, %v1770_v44, 0.0  ;;  %v1809_v57 = vsel %vm1765_vm5, %v1778_v11, 0.0  ;;  %v1810_v46 = vsel %vm1765_vm5, %v1782_v33, 0.0 }
 0x199   : > { %v1811_v22 = vsel %vm1765_vm5, %v1786_v25, 0.0  ;;  %v1814_v14 = vsel %vm1765_vm5, %v1798_v16, 0.0 }
 0x19a   : > { %v1329_v26 = vadd.f32 %v1328_v30, %v1327_v62  ;;  %v1813_v62 = vsel %vm1765_vm5, %v1794_v40, 0.0 }
 0x19c   : > { %v1617_v10 = vsub.f32 %v1609_v3, %v1329_v26 }
 0x19e   : > { %v3319_v31 = vmul.f32 %v3315_v37, %v1617_v10  ;;  %vm1694_vm4 = vcmp.ne.f32.partialorder %v1617_v10, 0.0 }
 0x19f   : > { %v1702_v61 = vsel %vm1694_vm4, 1.0, %v3552_v41  ;;  %v1790_v41 = vrot.slane %v1637_v42, %v3266_v7 }
 0x1a0   : > { %v1714_v49 = vcombine.low %v1701_v15, %v1702_v61  ;;  %v1903_v36 = vrot.slane %v3319_v31, %v3572_v29 }
 0x1a1   : > { %v1812_v32 = vsel %vm1765_vm5, %v1790_v41, 0.0 }
 0x1a2   : > { %v1742_v6 = vrot.slane %v1714_v49, %v3561_v23 }
 0x1a4   : > { %v1744_v28 = vcombine.low %v1735_v52, %v1742_v6 }
 0x1a6   : > { %v1758_v19 = vrot.slane %v1744_v28, %v3561_v23  ;;  %v1808_v23 = vsel %vm1765_vm5, %v1774_v1, 0.0 }
 0x1a8   : > { %v1759_v2 = vcombine.low %v1751_v63, %v1758_v19 }
 0x1aa   : > { %v1761_v51 = vmul.f32 %v3566_v20, %v1759_v2  ;;  %v1879_v20 = vrot.slane %v3224_v45, %v3572_v29 }
 0x1ac   : > { %v1847_v47 = vrot.slane %v1761_v51, %v3308_v13  ;;  %v1819_v30 = vrot.slane %v1761_v51, %v3572_v29  ;;  %v1823_v4 = vrot.slane %v1761_v51, %v3573_v38  ;;  %v1827_v3 = vrot.slane %v1761_v51, %v3570_v60 }
 0x1ad   : > { %v1831_v34 = vrot.slane %v1761_v51, %v3571_v43  ;;  %v1835_v24 = vrot.slane %v1761_v51, %v3147_v35  ;;  %v1839_v26 = vrot.slane %v1761_v51, %v3266_v7  ;;  %v1843_v5 = vrot.slane %v1761_v51, %v3286_v0 }
 0x1ae   : > { %v1856_v45 = vsel %vm1764_vm8, %v1819_v30, %v1807_v48  ;;  %v1857_v13 = vsel %vm1764_vm8, %v1823_v4, %v1808_v23  ;;  %v1858_v18 = vsel %vm1764_vm8, %v1827_v3, %v1809_v57  ;;  %v1863_v10 = vsel %vm1764_vm8, %v1847_v47, %v1814_v14 }
 0x1af   : > { %v1859_v15 = vsel %vm1764_vm8, %v1831_v34, %v1810_v46  ;;  %v1860_v35 = vsel %vm1764_vm8, %v1835_v24, %v1811_v22  ;;  %v1861_v7 = vsel %vm1764_vm8, %v1839_v26, %v1812_v32  ;;  %v1862_v0 = vsel %vm1764_vm8, %v1843_v5, %v1813_v62 }
 0x1b0   : > { %v1864_v31 = vsel %vm1763_vm7, %v3563_v21, %v1856_v45  ;;  %v1865_v42 = vsel %vm1763_vm7, %v3564_v39, %v1857_v13  ;;  %v1866_v61 = vsel %vm1763_vm7, %v3556_v56, %v1858_v18  ;;  %v1867_v49 = vsel %vm1763_vm7, %v3560_v8, %v1859_v15 }
 0x1b1   : > { %v1868_v52 = vsel %vm1763_vm7, %v3230_v17, %v1860_v35  ;;  %v1869_v21 = vsel %vm1763_vm7, %v3274_v59, %v1861_v7  ;;  %v1870_v39 = vsel %vm1763_vm7, %v3293_v58, %v1862_v0  ;;  %v1871_v56 = vsel %vm1763_vm7, %v3315_v37, %v1863_v10 }
 0x1b2   : > { %v1904_v6 = vsel %vm1762_vm6, %v1875_v27, %v1864_v31  ;;  %v1905_v8 = vsel %vm1762_vm6, %v1879_v20, %v1865_v42  ;;  %v1906_v17 = vsel %vm1762_vm6, %v1883_v50, %v1866_v61  ;;  %v1907_v59 = vsel %vm1762_vm6, %v1887_v12, %v1867_v49 }
 0x1b3   : > { %v1908_v58 = vsel %vm1762_vm6, %v1891_v54, %v1868_v52  ;;  %v1909_v37 = vsel %vm1762_vm6, %v1895_v55, %v1869_v21  ;;  %v1910_v60 = vsel %vm1762_vm6, %v1899_v53, %v1870_v39  ;;  %v1911_v11 = vsel %vm1762_vm6, %v1903_v36, %v1871_v56  ;;  %1928 = vst [vmem:[%s314_s25] sm:$0xff] %v1904_v6 }
 0x1b4   : > { %1929 = vst [vmem:[%s314_s25 + $0x8] sm:$0xff] %v1905_v8  ;;  %1930 = vst [vmem:[%s314_s25 + $0x10] sm:$0xff] %v1906_v17 }
 0x1b5   : > { %1931 = vst [vmem:[%s314_s25 + $0x18] sm:$0xff] %v1907_v59  ;;  %1932 = vst [vmem:[%s314_s25 + $0x20] sm:$0xff] %v1908_v58 }
 0x1b6   : > { %1933 = vst [vmem:[%s314_s25 + $0x28] sm:$0xff] %v1909_v37  ;;  %1934 = vst [vmem:[%s314_s25 + $0x30] sm:$0xff] %v1910_v60 }
 0x1b7   : > { %1935 = vst [vmem:[%s314_s25 + $0x38] sm:$0xff] %v1911_v11 }
 0x1b8   : > { %2308 = shalt.err (!%p2305_p5)
}
 0x1b9   : > { %s2309_s13 = scalar_lea.hbm %s3448_s21, 1024  ;;  %s2313_s16 = scalar_lea.hbm %s3502_s5, 2048 }
 0x1ba   : > { %p2310_p6 = scmp.ne.s32.totalorder %s3448_s21, %s2309_s13  ;;  %p2314_p10 = scmp.lt.u32.totalorder %s3448_s21, %s3502_s5 }
 0x1bb   : > { %p2315_p11 = scmp.lt.u32.totalorder %s2313_s16, %s2309_s13  ;;  %p2317_p13 = scmp.lt.u32.totalorder %s2309_s13, %s3448_s21 }
 0x1bc   : > { %p2311_p7 = pnand %p2310_p6, %p2449_p4 }
 0x1bd   : > { %p2316_p12 = por %p2315_p11, %p2314_p10 }
 0x1be   : > { %p2312_p9 = pneg %p2311_p7 }
 0x1bf   : > { %p2318_p0 = por %p2317_p13, %p2316_p12 }
 0x1c1   : > { %p2319_p1 = pnand %p2318_p0, %p2312_p9 }
 0x1c3   : > { %2322 = shalt.err (!%p2319_p1)
}
 0x1c4   : > { %2117 = dma.vmem_to_hbm [thread:$0]  (%p2449_p4), %s3450_s27, 1024, %s3448_s21, %s1937_s8  }
 0x1c5 PF: > { %p2123_p2 = scmp.ge.s32.totalorder %s2373_s23, 2  ;;  %s1963_s25 = sand.u32 1, %s2353_s18  }
 0x1c6   : > { %s1964_s29 = scalar_lea.sflag [#allocation3], %s1963_s25 }
 0x1c7   : > { %p2120_p3 = pnand %p2123_p2, %p2456_p8 }
 0x1c9   : > { %2348 = dma.done.wait (!%p2120_p3), %s1964_s29, 1024  }
 0x1ca   : > { %2350 = vsyncadd (!%p2120_p3), %s1964_s29, 4294966272  ;;  %s18_s23 = sadd.s32 1, %s2373_s23   ;;  %s3574_s18 = smov %s2357_s19 }
 0x1cb   : > { %p15_p5 = scmp.ge.s32.totalorder %s18_s23, 4   ;;  %s3575_s19 = smov %s2361_s20 }
 0x1cc   : > { %s3576_s20 = smov %s2462_s6  ;;  %s3577_s21 = smov %s2369_s22 }
 0x1cd   : > { %s3578_s22 = smov %s3580_s26  ;;  %17 = sbr.rel (!%p15_p5) target bundleno = 4 (0x4), region = 88 }
 0x1d4   :  { %1969 = vsyncpa [#allocation3], 1 }
 0x1d5   :  { %1971 = vsyncpa [#allocation3 + $0x1], 1 }

</bundles_post_ra>
